<compile_context>
chip_gen: v5e
topology: v5e:2x2
jax: 0.10.0
libtpu: 0.0.40
codegen_flags: <defaults>
</compile_context>

<pallas_src>
import functools

import jax
import jax.numpy as jnp
from jax import lax
from jax.experimental import pallas as pl
from jax.experimental.pallas import tpu as pltpu


def _confidence_ce_kernel(ct_ref, aw_ref, as_ref, nb_ref, s_ref, cnt_ref, *, true_b):
    """Per-tile body.  Layout: classes on sublanes, samples on lanes.

    aw_ref, as_ref: [C, TB] logits (weak / strong augmentation)
    nb_ref:         [K, C, TB] neighbor logits
    s_ref, cnt_ref: [1, C, 1] per-slice accumulators (outputs, resident across steps)
    """
    step = pl.program_id(1)

    @pl.when(step == 0)
    def _init():
        s_ref[...] = jnp.zeros_like(s_ref)
        cnt_ref[...] = jnp.zeros_like(cnt_ref)

    ct = ct_ref[0]
    c, tb = aw_ref.shape
    k = nb_ref.shape[0]

    aw = aw_ref[...].astype(jnp.float32)                       # [C, TB]

    # ---- softmax(anchors_weak) over the class (sublane) axis ---------------------
    col_max = jnp.max(aw, axis=0, keepdims=True)               # [1, TB]
    e_w = jnp.exp(aw - col_max)
    s_w = jnp.sum(e_w, axis=0, keepdims=True)
    wa_prob = e_w / s_w                                        # exact: keeps mask parity
    max_prob = jnp.max(wa_prob, axis=0, keepdims=True)         # [1, TB]

    class_ids = lax.broadcasted_iota(jnp.int32, (c, tb), 0)
    # first index of the per-sample max (matches argmax tie-breaking)
    target = jnp.min(jnp.where(aw == col_max, class_ids, c), axis=0, keepdims=True)

    tile_idx = pl.program_id(0) * pl.num_programs(1) + step
    sample_idx = tile_idx * tb + lax.broadcasted_iota(jnp.int32, (1, tb), 1)
    valid = sample_idx < true_b                                # lanes added by padding
    mask = jnp.logical_and(max_prob > ct, valid)               # [1, TB]

    # ---- beta: distance-weighted average of neighbor softmaxes -------------------
    # Each neighbor softmax normalization is fused into the per-(sample, k) scalar
    # weight exp(-dist^2)/denom; dist^2 = 2 - 2*cos is computed with rsqrt (no divide).
    ssq_aw = jnp.sum(aw * aw, axis=0, keepdims=True)           # [1, TB]
    beta = jnp.zeros((c, tb), jnp.float32)
    for j in range(k):                                         # K is small & static
        nb_j = nb_ref[j].astype(jnp.float32)                   # [C, TB] contiguous slab
        m_j = jnp.max(nb_j, axis=0, keepdims=True)
        e_j = jnp.exp(nb_j - m_j)
        denom_j = jnp.sum(e_j, axis=0, keepdims=True)          # [1, TB]
        dot_j = jnp.sum(aw * nb_j, axis=0, keepdims=True)
        ssq_nb = jnp.sum(nb_j * nb_j, axis=0, keepdims=True)
        cos_j = dot_j * lax.rsqrt(ssq_aw * ssq_nb)
        w_j = jnp.exp(2.0 * cos_j - 2.0) * (1.0 / denom_j)     # exp(-dist^2)/denom
        beta = beta + w_j * e_j
    beta = beta * (1.0 / jnp.sum(beta, axis=0, keepdims=True))

    # ---- per-sample sharpening: q ~ wa_prob**alpha == softmax(alpha*(aw - max)) ---
    diff = wa_prob - beta
    dnorm2 = jnp.sum(diff * diff, axis=0, keepdims=True)
    alpha = jnp.minimum(jnp.maximum(1.0, lax.rsqrt(dnorm2)), 100.0)   # clamp(max=100)
    q_un = jnp.exp(alpha * (aw - col_max))                     # s_w**alpha cancels below
    q = q_un * (1.0 / jnp.sum(q_un, axis=0, keepdims=True))

    # ---- log_softmax(anchors_strong) ----------------------------------------------
    a_s = as_ref[...].astype(jnp.float32)                      # [C, TB]
    s_max = jnp.max(a_s, axis=0, keepdims=True)
    s_shift = a_s - s_max
    lsm = s_shift - jnp.log(jnp.sum(jnp.exp(s_shift), axis=0, keepdims=True))

    # ---- masked per-class accumulation (select-based guard vs padded-lane NaNs) ---
    contrib = jnp.where(mask, q * lsm, 0.0)                    # [C, TB]
    onehot = jnp.where(jnp.logical_and(mask, class_ids == target), 1.0, 0.0)

    s_ref[...] += jnp.sum(contrib, axis=1, keepdims=True)[None]    # -> [1, C, 1]
    cnt_ref[...] += jnp.sum(onehot, axis=1, keepdims=True)[None]


def _round_up(x, m):
    return ((x + m - 1) // m) * m


def _vmem_capacity_bytes():
    try:
        cap = int(pltpu.get_tpu_info().vmem_capacity_bytes)
        if cap > 0:
            return cap
    except Exception:
        pass
    return 64 * 1024 * 1024        # conservative: v7x per-TensorCore VMEM


def _auto_block_cols(b, k, c, vmem_cap, itemsize=4):
    """Batch tile (lane count), padding-aware: (2+K) [C_pad, TB] f32 slabs, double-buffered.

    Capped at 256 lanes so the ~8 live [C, TB] f32 temporaries stay within the 64-vreg
    file (spill knee); sweep block_rows in {128, 256, 512} per generation if desired.
    """
    c_pad = _round_up(c, 8)                          # sublane padding of the class dim
    bytes_per_col = (2 + k) * c_pad * itemsize       # weak + strong + K neighbor slices
    budget = vmem_cap // 8                           # headroom for pipeliner/spill scratch
    tb = budget // (2 * bytes_per_col)               # x2: BlockSpec double buffering
    tb = max(128, min((int(tb) // 128) * 128, 256))
    return min(tb, _round_up(b, 128))


@functools.partial(jax.jit, static_argnames=("block_rows", "num_slices"))
def confidence_based_ce(anchors_weak, anchors_strong, neighbors, ct, h,
                        block_rows=None, num_slices=2):
    """Forward pass of ConfidenceBasedCE (apply_class_balancing=True path)."""
    b, c = anchors_weak.shape
    k = neighbors.shape[1]

    vmem_cap = _vmem_capacity_bytes()
    tb = block_rows if block_rows is not None else _auto_block_cols(b, k, c, vmem_cap)
    tb = max(128, _round_up(tb, 128))
    g = max(1, int(num_slices))                      # parallel batch slices (2 TCs on v7x)
    b_pad = _round_up(b, g * tb)
    n_steps = b_pad // (g * tb)
    pad = b_pad - b

    # Batch-on-lanes layout: classes on sublanes, samples on the 128-lane axis.
    # (bf16 inputs would also be accepted here and upcast in-kernel to halve HBM traffic.)
    aw_t = jnp.pad(anchors_weak, ((0, pad), (0, 0))).T                              # [C, Bp]
    as_t = jnp.pad(anchors_strong, ((0, pad), (0, 0))).T                            # [C, Bp]
    nb_t = jnp.transpose(jnp.pad(neighbors, ((0, pad), (0, 0), (0, 0))), (1, 2, 0)) # [K, C, Bp]

    ct_arr = jnp.asarray(ct, jnp.float32).reshape((1,))

    s_part, cnt_part = pl.pallas_call(
        functools.partial(_confidence_ce_kernel, true_b=b),
        grid=(g, n_steps),
        in_specs=[
            pl.BlockSpec(memory_space=pltpu.MemorySpace.SMEM),                    # ct
            pl.BlockSpec((c, tb), lambda gi, si: (0, gi * n_steps + si)),         # weak
            pl.BlockSpec((c, tb), lambda gi, si: (0, gi * n_steps + si)),         # strong
            pl.BlockSpec((k, c, tb), lambda gi, si: (0, 0, gi * n_steps + si)),   # neighbors
        ],
        out_specs=(
            pl.BlockSpec((1, c, 1), lambda gi, si: (gi, 0, 0)),   # S partials (resident)
            pl.BlockSpec((1, c, 1), lambda gi, si: (gi, 0, 0)),   # count partials
        ),
        out_shape=(
            jax.ShapeDtypeStruct((g, c, 1), jnp.float32),
            jax.ShapeDtypeStruct((g, c, 1), jnp.float32),
        ),
        compiler_params=pltpu.CompilerParams(
            dimension_semantics=("parallel", "arbitrary"),
            vmem_limit_bytes=min(vmem_cap // 4, 32 * 1024 * 1024),
        ),
    )(ct_arr, aw_t, as_t, nb_t)

    # ---- tiny O(C) epilogue: class-balancing weights + final loss ------------------
    s_c = jnp.sum(s_part[:, :, 0], axis=0)           # [C]
    counts = jnp.sum(cnt_part[:, :, 0], axis=0)      # [C]  (== torch.unique counts)
    n = jnp.sum(counts)                              # number of confident samples
    h_f = jnp.asarray(h, jnp.float32)
    freq = counts / n
    weight = jnp.where(counts > 0, 1.0 / jnp.log(h_f + freq), 1.0)
    weight = jnp.clip(weight, 1.0, 50.0)
    w_avg = weight / jnp.sum(weight) * jnp.mean(weight)
    # TODO(synk): like the PyTorch original, n == 0 (no confident sample) yields NaN;
    # the original raises ValueError instead, which has no in-graph equivalent.
    return -jnp.sum(w_avg * s_c) / n


def _confidence_ce_ref(anchors_weak, anchors_strong, neighbors, ct, h):
    """Pure-JAX mirror of the PyTorch ConfidenceBasedCE.forward (class balancing on)."""
    wa = jax.nn.softmax(anchors_weak, axis=1)
    b, c = wa.shape
    max_prob = jnp.max(wa, axis=1)
    target = jnp.argmax(wa, axis=1)
    mask = max_prob > ct
    n = jnp.sum(mask)

    nb_prob = jax.nn.softmax(neighbors, axis=2)
    aw_nl = anchors_weak / jnp.linalg.norm(anchors_weak, axis=1, keepdims=True)
    nb_nl = neighbors / jnp.linalg.norm(neighbors, axis=2, keepdims=True)
    d = jnp.linalg.norm(aw_nl[:, None, :] - nb_nl, axis=2)
    beta = jnp.sum(jnp.exp(-d ** 2)[:, :, None] * nb_prob, axis=1)
    beta = beta / jnp.sum(beta, axis=1, keepdims=True)

    alpha = jnp.minimum(
        jnp.maximum(1.0, 1.0 / jnp.linalg.norm(wa - beta, axis=1)), 100.0)
    q = wa ** alpha[:, None]
    q = q / jnp.sum(q, axis=1, keepdims=True)

    counts = jnp.sum(jnp.where(mask[:, None], jax.nn.one_hot(target, c), 0.0), axis=0)
    freq = counts / n
    weight = jnp.where(counts > 0, 1.0 / jnp.log(h + freq), 1.0)
    weight = jnp.clip(weight, 1.0, 50.0)

    lsm = jax.nn.log_softmax(anchors_strong, axis=1)
    w_avg = weight[None, :] / jnp.sum(weight) * jnp.mean(weight)
    per_row = jnp.sum(w_avg * q * lsm, axis=1)
    loss = -jnp.sum(jnp.where(mask, per_row, 0.0)) / n
    return loss


if __name__ == "__main__":
    key = jax.random.PRNGKey(0)
    k1, k2, k3 = jax.random.split(key, 3)

    b, c, k = 300, 16, 5          # batch, num_classes, neighbors per anchor
    ct, h = 0.15, 1.05            # confidence threshold, class-balancing smoothing

    anchors_weak = jax.random.normal(k1, (b, c), dtype=jnp.float32)
    anchors_strong = jax.random.normal(k2, (b, c), dtype=jnp.float32)
    neighbors = jax.random.normal(k3, (b, k, c), dtype=jnp.float32)

    # block_rows=128, num_slices=2 -> grid (2, 2): exercises per-slice init/accumulate,
    # the parallel slice axis, and lane padding of the last tile.
    loss = confidence_based_ce(anchors_weak, anchors_strong, neighbors, ct, h,
                               block_rows=128, num_slices=2)
    jax.block_until_ready(loss)

    loss_ref = _confidence_ce_ref(anchors_weak, anchors_strong, neighbors, ct, h)
    assert bool(jnp.isfinite(loss_ref)), "reference produced non-finite loss"
    assert jnp.allclose(loss, loss_ref, atol=1e-3, rtol=1e-3), (loss, loss_ref)

    print("KERNEL_OK")
</pallas_src>

<mosaic_0001>
module attributes {stable_mosaic.version = 11 : i64} {
  func.func @_confidence_ce_kernel(%arg0: i32, %arg1: i32, %arg2: memref<1xf32, #tpu.memory_space<smem>>, %arg3: memref<16x128xf32, #tpu.memory_space<vmem>>, %arg4: memref<16x128xf32, #tpu.memory_space<vmem>>, %arg5: memref<5x16x128xf32, #tpu.memory_space<vmem>>, %arg6: memref<1x16x1xf32, #tpu.memory_space<vmem>>, %arg7: memref<1x16x1xf32, #tpu.memory_space<vmem>>) attributes {dimension_semantics = [#tpu.dimension_semantics<parallel>, #tpu.dimension_semantics<arbitrary>], iteration_bounds = array<i64: 2, 2>, scalar_prefetch = 0 : i64, scratch_operands = 0 : i64, tpu.core_type = #tpu.core_type<tc>, window_params = [{transform_indices = @transform_0, window_bounds = array<i64: 1>}, {transform_indices = @transform_1, window_bounds = array<i64: 16, 128>}, {transform_indices = @transform_2, window_bounds = array<i64: 16, 128>}, {transform_indices = @transform_3, window_bounds = array<i64: 5, 16, 128>}, {transform_indices = @transform_4, window_bounds = array<i64: 1, 16, 1>}, {transform_indices = @transform_5, window_bounds = array<i64: 1, 16, 1>}]} {
    %c0_i32 = arith.constant 0 : i32
    %0 = arith.cmpi eq, %arg1, %c0_i32 : i32
    %1 = arith.extui %0 : i1 to i32
    %c0_i32_0 = arith.constant 0 : i32
    %2 = arith.cmpi ne, %1, %c0_i32_0 : i32
    scf.if %2 {
      %cst_82 = arith.constant 0.000000e+00 : f32
      %244 = vector.broadcast %cst_82 : f32 to vector<1x16x1xf32>
      %c0_83 = arith.constant 0 : index
      %c0_84 = arith.constant 0 : index
      %c0_85 = arith.constant 0 : index
      %245 = vector.load %arg6[%c0_83, %c0_84, %c0_85] : memref<1x16x1xf32, #tpu.memory_space<vmem>>, vector<1x16x1xf32>
      tpu.vector_store %arg6[%c0_83, %c0_84, %c0_85], %244 {strides = array<i32>} : memref<1x16x1xf32, #tpu.memory_space<vmem>>, vector<1x16x1xf32>,
      %cst_86 = arith.constant 0.000000e+00 : f32
      %246 = vector.broadcast %cst_86 : f32 to vector<1x16x1xf32>
      %c0_87 = arith.constant 0 : index
      %c0_88 = arith.constant 0 : index
      %c0_89 = arith.constant 0 : index
      %247 = vector.load %arg7[%c0_87, %c0_88, %c0_89] : memref<1x16x1xf32, #tpu.memory_space<vmem>>, vector<1x16x1xf32>
      tpu.vector_store %arg7[%c0_87, %c0_88, %c0_89], %246 {strides = array<i32>} : memref<1x16x1xf32, #tpu.memory_space<vmem>>, vector<1x16x1xf32>,
    } else {
    }
    %c0 = arith.constant 0 : index
    %3 = memref.load %arg2[%c0] : memref<1xf32, #tpu.memory_space<smem>>
    %c0_1 = arith.constant 0 : index
    %c0_2 = arith.constant 0 : index
    %4 = vector.load %arg3[%c0_1, %c0_2] : memref<16x128xf32, #tpu.memory_space<vmem>>, vector<16x128xf32>
    %cst = arith.constant dense<0xFF800000> : vector<128xf32>
    %5 = vector.multi_reduction <maximumf>, %4, %cst [0] : vector<16x128xf32> to vector<128xf32>
    %6 = vector.shape_cast %5 : vector<128xf32> to vector<1x128xf32>
    %7 = vector.broadcast %6 : vector<1x128xf32> to vector<16x128xf32>
    %8 = arith.subf %4, %7 : vector<16x128xf32>
    %9 = math.exp %8 : vector<16x128xf32>
    %cst_3 = arith.constant dense<0.000000e+00> : vector<128xf32>
    %10 = vector.multi_reduction <add>, %9, %cst_3 [0] : vector<16x128xf32> to vector<128xf32>
    %11 = vector.shape_cast %10 : vector<128xf32> to vector<1x128xf32>
    %12 = vector.broadcast %11 : vector<1x128xf32> to vector<16x128xf32>
    %13 = arith.divf %9, %12 : vector<16x128xf32>
    %cst_4 = arith.constant dense<0xFF800000> : vector<128xf32>
    %14 = vector.multi_reduction <maximumf>, %13, %cst_4 [0] : vector<16x128xf32> to vector<128xf32>
    %15 = vector.shape_cast %14 : vector<128xf32> to vector<1x128xf32>
    %16 = tpu.iota {dimensions = array<i32: 0>} : vector<16x128xi32>
    %17 = vector.broadcast %6 : vector<1x128xf32> to vector<16x128xf32>
    %18 = arith.cmpf oeq, %4, %17 : vector<16x128xf32>
    %c16_i32 = arith.constant 16 : i32
    %19 = vector.broadcast %c16_i32 : i32 to vector<16x128xi32>
    %20 = arith.select %18, %16, %19 : vector<16x128xi1>, vector<16x128xi32>
    %cst_5 = arith.constant dense<2147483647> : vector<128xi32>
    %21 = vector.multi_reduction <minsi>, %20, %cst_5 [0] : vector<16x128xi32> to vector<128xi32>
    %22 = vector.shape_cast %21 : vector<128xi32> to vector<1x128xi32>
    %c2_i32 = arith.constant 2 : i32
    %23 = arith.muli %arg0, %c2_i32 : i32
    %24 = arith.addi %23, %arg1 : i32
    %c128_i32 = arith.constant 128 : i32
    %25 = arith.muli %24, %c128_i32 : i32
    %26 = tpu.iota {dimensions = array<i32: 1>} : vector<1x128xi32>
    %27 = vector.broadcast %25 : i32 to vector<1x128xi32>
    %28 = arith.addi %27, %26 : vector<1x128xi32>
    %c300_i32 = arith.constant 300 : i32
    %29 = vector.broadcast %c300_i32 : i32 to vector<1x128xi32>
    %30 = arith.cmpi slt, %28, %29 : vector<1x128xi32>
    %31 = vector.broadcast %3 : f32 to vector<1x128xf32>
    %32 = arith.cmpf ogt, %15, %31 : vector<1x128xf32>
    %33 = arith.andi %32, %30 : vector<1x128xi1>
    %34 = arith.mulf %4, %4 : vector<16x128xf32>
    %cst_6 = arith.constant dense<0.000000e+00> : vector<128xf32>
    %35 = vector.multi_reduction <add>, %34, %cst_6 [0] : vector<16x128xf32> to vector<128xf32>
    %36 = vector.shape_cast %35 : vector<128xf32> to vector<1x128xf32>
    %cst_7 = arith.constant 0.000000e+00 : f32
    %37 = vector.broadcast %cst_7 : f32 to vector<16x128xf32>
    %c0_8 = arith.constant 0 : index
    %c0_9 = arith.constant 0 : index
    %c0_10 = arith.constant 0 : index
    %38 = vector.load %arg5[%c0_8, %c0_9, %c0_10] : memref<5x16x128xf32, #tpu.memory_space<vmem>>, vector<1x16x128xf32>
    %39 = vector.shape_cast %38 : vector<1x16x128xf32> to vector<16x128xf32>
    %cst_11 = arith.constant dense<0xFF800000> : vector<128xf32>
    %40 = vector.multi_reduction <maximumf>, %39, %cst_11 [0] : vector<16x128xf32> to vector<128xf32>
    %41 = vector.shape_cast %40 : vector<128xf32> to vector<1x128xf32>
    %42 = vector.broadcast %41 : vector<1x128xf32> to vector<16x128xf32>
    %43 = arith.subf %39, %42 : vector<16x128xf32>
    %44 = math.exp %43 : vector<16x128xf32>
    %cst_12 = arith.constant dense<0.000000e+00> : vector<128xf32>
    %45 = vector.multi_reduction <add>, %44, %cst_12 [0] : vector<16x128xf32> to vector<128xf32>
    %46 = vector.shape_cast %45 : vector<128xf32> to vector<1x128xf32>
    %47 = arith.mulf %4, %39 : vector<16x128xf32>
    %cst_13 = arith.constant dense<0.000000e+00> : vector<128xf32>
    %48 = vector.multi_reduction <add>, %47, %cst_13 [0] : vector<16x128xf32> to vector<128xf32>
    %49 = vector.shape_cast %48 : vector<128xf32> to vector<1x128xf32>
    %50 = arith.mulf %39, %39 : vector<16x128xf32>
    %cst_14 = arith.constant dense<0.000000e+00> : vector<128xf32>
    %51 = vector.multi_reduction <add>, %50, %cst_14 [0] : vector<16x128xf32> to vector<128xf32>
    %52 = vector.shape_cast %51 : vector<128xf32> to vector<1x128xf32>
    %53 = arith.mulf %36, %52 : vector<1x128xf32>
    %54 = math.rsqrt %53 : vector<1x128xf32>
    %55 = arith.mulf %49, %54 : vector<1x128xf32>
    %cst_15 = arith.constant 2.000000e+00 : f32
    %56 = vector.broadcast %cst_15 : f32 to vector<1x128xf32>
    %57 = arith.mulf %56, %55 : vector<1x128xf32>
    %cst_16 = arith.constant 2.000000e+00 : f32
    %58 = vector.broadcast %cst_16 : f32 to vector<1x128xf32>
    %59 = arith.subf %57, %58 : vector<1x128xf32>
    %60 = math.exp %59 : vector<1x128xf32>
    %cst_17 = arith.constant 1.000000e+00 : f32
    %61 = vector.broadcast %cst_17 : f32 to vector<1x128xf32>
    %62 = arith.divf %61, %46 : vector<1x128xf32>
    %63 = arith.mulf %60, %62 : vector<1x128xf32>
    %64 = vector.broadcast %63 : vector<1x128xf32> to vector<16x128xf32>
    %65 = arith.mulf %64, %44 : vector<16x128xf32>
    %66 = arith.addf %37, %65 : vector<16x128xf32>
    %c1 = arith.constant 1 : index
    %c0_18 = arith.constant 0 : index
    %c0_19 = arith.constant 0 : index
    %67 = vector.load %arg5[%c1, %c0_18, %c0_19] : memref<5x16x128xf32, #tpu.memory_space<vmem>>, vector<1x16x128xf32>
    %68 = vector.shape_cast %67 : vector<1x16x128xf32> to vector<16x128xf32>
    %cst_20 = arith.constant dense<0xFF800000> : vector<128xf32>
    %69 = vector.multi_reduction <maximumf>, %68, %cst_20 [0] : vector<16x128xf32> to vector<128xf32>
    %70 = vector.shape_cast %69 : vector<128xf32> to vector<1x128xf32>
    %71 = vector.broadcast %70 : vector<1x128xf32> to vector<16x128xf32>
    %72 = arith.subf %68, %71 : vector<16x128xf32>
    %73 = math.exp %72 : vector<16x128xf32>
    %cst_21 = arith.constant dense<0.000000e+00> : vector<128xf32>
    %74 = vector.multi_reduction <add>, %73, %cst_21 [0] : vector<16x128xf32> to vector<128xf32>
    %75 = vector.shape_cast %74 : vector<128xf32> to vector<1x128xf32>
    %76 = arith.mulf %4, %68 : vector<16x128xf32>
    %cst_22 = arith.constant dense<0.000000e+00> : vector<128xf32>
    %77 = vector.multi_reduction <add>, %76, %cst_22 [0] : vector<16x128xf32> to vector<128xf32>
    %78 = vector.shape_cast %77 : vector<128xf32> to vector<1x128xf32>
    %79 = arith.mulf %68, %68 : vector<16x128xf32>
    %cst_23 = arith.constant dense<0.000000e+00> : vector<128xf32>
    %80 = vector.multi_reduction <add>, %79, %cst_23 [0] : vector<16x128xf32> to vector<128xf32>
    %81 = vector.shape_cast %80 : vector<128xf32> to vector<1x128xf32>
    %82 = arith.mulf %36, %81 : vector<1x128xf32>
    %83 = math.rsqrt %82 : vector<1x128xf32>
    %84 = arith.mulf %78, %83 : vector<1x128xf32>
    %cst_24 = arith.constant 2.000000e+00 : f32
    %85 = vector.broadcast %cst_24 : f32 to vector<1x128xf32>
    %86 = arith.mulf %85, %84 : vector<1x128xf32>
    %cst_25 = arith.constant 2.000000e+00 : f32
    %87 = vector.broadcast %cst_25 : f32 to vector<1x128xf32>
    %88 = arith.subf %86, %87 : vector<1x128xf32>
    %89 = math.exp %88 : vector<1x128xf32>
    %cst_26 = arith.constant 1.000000e+00 : f32
    %90 = vector.broadcast %cst_26 : f32 to vector<1x128xf32>
    %91 = arith.divf %90, %75 : vector<1x128xf32>
    %92 = arith.mulf %89, %91 : vector<1x128xf32>
    %93 = vector.broadcast %92 : vector<1x128xf32> to vector<16x128xf32>
    %94 = arith.mulf %93, %73 : vector<16x128xf32>
    %95 = arith.addf %66, %94 : vector<16x128xf32>
    %c2 = arith.constant 2 : index
    %c0_27 = arith.constant 0 : index
    %c0_28 = arith.constant 0 : index
    %96 = vector.load %arg5[%c2, %c0_27, %c0_28] : memref<5x16x128xf32, #tpu.memory_space<vmem>>, vector<1x16x128xf32>
    %97 = vector.shape_cast %96 : vector<1x16x128xf32> to vector<16x128xf32>
    %cst_29 = arith.constant dense<0xFF800000> : vector<128xf32>
    %98 = vector.multi_reduction <maximumf>, %97, %cst_29 [0] : vector<16x128xf32> to vector<128xf32>
    %99 = vector.shape_cast %98 : vector<128xf32> to vector<1x128xf32>
    %100 = vector.broadcast %99 : vector<1x128xf32> to vector<16x128xf32>
    %101 = arith.subf %97, %100 : vector<16x128xf32>
    %102 = math.exp %101 : vector<16x128xf32>
    %cst_30 = arith.constant dense<0.000000e+00> : vector<128xf32>
    %103 = vector.multi_reduction <add>, %102, %cst_30 [0] : vector<16x128xf32> to vector<128xf32>
    %104 = vector.shape_cast %103 : vector<128xf32> to vector<1x128xf32>
    %105 = arith.mulf %4, %97 : vector<16x128xf32>
    %cst_31 = arith.constant dense<0.000000e+00> : vector<128xf32>
    %106 = vector.multi_reduction <add>, %105, %cst_31 [0] : vector<16x128xf32> to vector<128xf32>
    %107 = vector.shape_cast %106 : vector<128xf32> to vector<1x128xf32>
    %108 = arith.mulf %97, %97 : vector<16x128xf32>
    %cst_32 = arith.constant dense<0.000000e+00> : vector<128xf32>
    %109 = vector.multi_reduction <add>, %108, %cst_32 [0] : vector<16x128xf32> to vector<128xf32>
    %110 = vector.shape_cast %109 : vector<128xf32> to vector<1x128xf32>
    %111 = arith.mulf %36, %110 : vector<1x128xf32>
    %112 = math.rsqrt %111 : vector<1x128xf32>
    %113 = arith.mulf %107, %112 : vector<1x128xf32>
    %cst_33 = arith.constant 2.000000e+00 : f32
    %114 = vector.broadcast %cst_33 : f32 to vector<1x128xf32>
    %115 = arith.mulf %114, %113 : vector<1x128xf32>
    %cst_34 = arith.constant 2.000000e+00 : f32
    %116 = vector.broadcast %cst_34 : f32 to vector<1x128xf32>
    %117 = arith.subf %115, %116 : vector<1x128xf32>
    %118 = math.exp %117 : vector<1x128xf32>
    %cst_35 = arith.constant 1.000000e+00 : f32
    %119 = vector.broadcast %cst_35 : f32 to vector<1x128xf32>
    %120 = arith.divf %119, %104 : vector<1x128xf32>
    %121 = arith.mulf %118, %120 : vector<1x128xf32>
    %122 = vector.broadcast %121 : vector<1x128xf32> to vector<16x128xf32>
    %123 = arith.mulf %122, %102 : vector<16x128xf32>
    %124 = arith.addf %95, %123 : vector<16x128xf32>
    %c3 = arith.constant 3 : index
    %c0_36 = arith.constant 0 : index
    %c0_37 = arith.constant 0 : index
    %125 = vector.load %arg5[%c3, %c0_36, %c0_37] : memref<5x16x128xf32, #tpu.memory_space<vmem>>, vector<1x16x128xf32>
    %126 = vector.shape_cast %125 : vector<1x16x128xf32> to vector<16x128xf32>
    %cst_38 = arith.constant dense<0xFF800000> : vector<128xf32>
    %127 = vector.multi_reduction <maximumf>, %126, %cst_38 [0] : vector<16x128xf32> to vector<128xf32>
    %128 = vector.shape_cast %127 : vector<128xf32> to vector<1x128xf32>
    %129 = vector.broadcast %128 : vector<1x128xf32> to vector<16x128xf32>
    %130 = arith.subf %126, %129 : vector<16x128xf32>
    %131 = math.exp %130 : vector<16x128xf32>
    %cst_39 = arith.constant dense<0.000000e+00> : vector<128xf32>
    %132 = vector.multi_reduction <add>, %131, %cst_39 [0] : vector<16x128xf32> to vector<128xf32>
    %133 = vector.shape_cast %132 : vector<128xf32> to vector<1x128xf32>
    %134 = arith.mulf %4, %126 : vector<16x128xf32>
    %cst_40 = arith.constant dense<0.000000e+00> : vector<128xf32>
    %135 = vector.multi_reduction <add>, %134, %cst_40 [0] : vector<16x128xf32> to vector<128xf32>
    %136 = vector.shape_cast %135 : vector<128xf32> to vector<1x128xf32>
    %137 = arith.mulf %126, %126 : vector<16x128xf32>
    %cst_41 = arith.constant dense<0.000000e+00> : vector<128xf32>
    %138 = vector.multi_reduction <add>, %137, %cst_41 [0] : vector<16x128xf32> to vector<128xf32>
    %139 = vector.shape_cast %138 : vector<128xf32> to vector<1x128xf32>
    %140 = arith.mulf %36, %139 : vector<1x128xf32>
    %141 = math.rsqrt %140 : vector<1x128xf32>
    %142 = arith.mulf %136, %141 : vector<1x128xf32>
    %cst_42 = arith.constant 2.000000e+00 : f32
    %143 = vector.broadcast %cst_42 : f32 to vector<1x128xf32>
    %144 = arith.mulf %143, %142 : vector<1x128xf32>
    %cst_43 = arith.constant 2.000000e+00 : f32
    %145 = vector.broadcast %cst_43 : f32 to vector<1x128xf32>
    %146 = arith.subf %144, %145 : vector<1x128xf32>
    %147 = math.exp %146 : vector<1x128xf32>
    %cst_44 = arith.constant 1.000000e+00 : f32
    %148 = vector.broadcast %cst_44 : f32 to vector<1x128xf32>
    %149 = arith.divf %148, %133 : vector<1x128xf32>
    %150 = arith.mulf %147, %149 : vector<1x128xf32>
    %151 = vector.broadcast %150 : vector<1x128xf32> to vector<16x128xf32>
    %152 = arith.mulf %151, %131 : vector<16x128xf32>
    %153 = arith.addf %124, %152 : vector<16x128xf32>
    %c4 = arith.constant 4 : index
    %c0_45 = arith.constant 0 : index
    %c0_46 = arith.constant 0 : index
    %154 = vector.load %arg5[%c4, %c0_45, %c0_46] : memref<5x16x128xf32, #tpu.memory_space<vmem>>, vector<1x16x128xf32>
    %155 = vector.shape_cast %154 : vector<1x16x128xf32> to vector<16x128xf32>
    %cst_47 = arith.constant dense<0xFF800000> : vector<128xf32>
    %156 = vector.multi_reduction <maximumf>, %155, %cst_47 [0] : vector<16x128xf32> to vector<128xf32>
    %157 = vector.shape_cast %156 : vector<128xf32> to vector<1x128xf32>
    %158 = vector.broadcast %157 : vector<1x128xf32> to vector<16x128xf32>
    %159 = arith.subf %155, %158 : vector<16x128xf32>
    %160 = math.exp %159 : vector<16x128xf32>
    %cst_48 = arith.constant dense<0.000000e+00> : vector<128xf32>
    %161 = vector.multi_reduction <add>, %160, %cst_48 [0] : vector<16x128xf32> to vector<128xf32>
    %162 = vector.shape_cast %161 : vector<128xf32> to vector<1x128xf32>
    %163 = arith.mulf %4, %155 : vector<16x128xf32>
    %cst_49 = arith.constant dense<0.000000e+00> : vector<128xf32>
    %164 = vector.multi_reduction <add>, %163, %cst_49 [0] : vector<16x128xf32> to vector<128xf32>
    %165 = vector.shape_cast %164 : vector<128xf32> to vector<1x128xf32>
    %166 = arith.mulf %155, %155 : vector<16x128xf32>
    %cst_50 = arith.constant dense<0.000000e+00> : vector<128xf32>
    %167 = vector.multi_reduction <add>, %166, %cst_50 [0] : vector<16x128xf32> to vector<128xf32>
    %168 = vector.shape_cast %167 : vector<128xf32> to vector<1x128xf32>
    %169 = arith.mulf %36, %168 : vector<1x128xf32>
    %170 = math.rsqrt %169 : vector<1x128xf32>
    %171 = arith.mulf %165, %170 : vector<1x128xf32>
    %cst_51 = arith.constant 2.000000e+00 : f32
    %172 = vector.broadcast %cst_51 : f32 to vector<1x128xf32>
    %173 = arith.mulf %172, %171 : vector<1x128xf32>
    %cst_52 = arith.constant 2.000000e+00 : f32
    %174 = vector.broadcast %cst_52 : f32 to vector<1x128xf32>
    %175 = arith.subf %173, %174 : vector<1x128xf32>
    %176 = math.exp %175 : vector<1x128xf32>
    %cst_53 = arith.constant 1.000000e+00 : f32
    %177 = vector.broadcast %cst_53 : f32 to vector<1x128xf32>
    %178 = arith.divf %177, %162 : vector<1x128xf32>
    %179 = arith.mulf %176, %178 : vector<1x128xf32>
    %180 = vector.broadcast %179 : vector<1x128xf32> to vector<16x128xf32>
    %181 = arith.mulf %180, %160 : vector<16x128xf32>
    %182 = arith.addf %153, %181 : vector<16x128xf32>
    %cst_54 = arith.constant dense<0.000000e+00> : vector<128xf32>
    %183 = vector.multi_reduction <add>, %182, %cst_54 [0] : vector<16x128xf32> to vector<128xf32>
    %184 = vector.shape_cast %183 : vector<128xf32> to vector<1x128xf32>
    %cst_55 = arith.constant 1.000000e+00 : f32
    %185 = vector.broadcast %cst_55 : f32 to vector<1x128xf32>
    %186 = arith.divf %185, %184 : vector<1x128xf32>
    %187 = vector.broadcast %186 : vector<1x128xf32> to vector<16x128xf32>
    %188 = arith.mulf %182, %187 : vector<16x128xf32>
    %189 = arith.subf %13, %188 : vector<16x128xf32>
    %190 = arith.mulf %189, %189 : vector<16x128xf32>
    %cst_56 = arith.constant dense<0.000000e+00> : vector<128xf32>
    %191 = vector.multi_reduction <add>, %190, %cst_56 [0] : vector<16x128xf32> to vector<128xf32>
    %192 = vector.shape_cast %191 : vector<128xf32> to vector<1x128xf32>
    %193 = math.rsqrt %192 : vector<1x128xf32>
    %cst_57 = arith.constant 1.000000e+00 : f32
    %194 = vector.broadcast %cst_57 : f32 to vector<1x128xf32>
    %195 = arith.maximumf %194, %193 : vector<1x128xf32>
    %cst_58 = arith.constant 1.000000e+02 : f32
    %196 = vector.broadcast %cst_58 : f32 to vector<1x128xf32>
    %197 = arith.minimumf %195, %196 : vector<1x128xf32>
    %198 = vector.broadcast %6 : vector<1x128xf32> to vector<16x128xf32>
    %199 = arith.subf %4, %198 : vector<16x128xf32>
    %200 = vector.broadcast %197 : vector<1x128xf32> to vector<16x128xf32>
    %201 = arith.mulf %200, %199 : vector<16x128xf32>
    %202 = math.exp %201 : vector<16x128xf32>
    %cst_59 = arith.constant dense<0.000000e+00> : vector<128xf32>
    %203 = vector.multi_reduction <add>, %202, %cst_59 [0] : vector<16x128xf32> to vector<128xf32>
    %204 = vector.shape_cast %203 : vector<128xf32> to vector<1x128xf32>
    %cst_60 = arith.constant 1.000000e+00 : f32
    %205 = vector.broadcast %cst_60 : f32 to vector<1x128xf32>
    %206 = arith.divf %205, %204 : vector<1x128xf32>
    %207 = vector.broadcast %206 : vector<1x128xf32> to vector<16x128xf32>
    %208 = arith.mulf %202, %207 : vector<16x128xf32>
    %c0_61 = arith.constant 0 : index
    %c0_62 = arith.constant 0 : index
    %209 = vector.load %arg4[%c0_61, %c0_62] : memref<16x128xf32, #tpu.memory_space<vmem>>, vector<16x128xf32>
    %cst_63 = arith.constant dense<0xFF800000> : vector<128xf32>
    %210 = vector.multi_reduction <maximumf>, %209, %cst_63 [0] : vector<16x128xf32> to vector<128xf32>
    %211 = vector.shape_cast %210 : vector<128xf32> to vector<1x128xf32>
    %212 = vector.broadcast %211 : vector<1x128xf32> to vector<16x128xf32>
    %213 = arith.subf %209, %212 : vector<16x128xf32>
    %214 = math.exp %213 : vector<16x128xf32>
    %cst_64 = arith.constant dense<0.000000e+00> : vector<128xf32>
    %215 = vector.multi_reduction <add>, %214, %cst_64 [0] : vector<16x128xf32> to vector<128xf32>
    %216 = vector.shape_cast %215 : vector<128xf32> to vector<1x128xf32>
    %217 = math.log %216 : vector<1x128xf32>
    %218 = vector.broadcast %217 : vector<1x128xf32> to vector<16x128xf32>
    %219 = arith.subf %213, %218 : vector<16x128xf32>
    %220 = arith.mulf %208, %219 : vector<16x128xf32>
    %cst_65 = arith.constant 0.000000e+00 : f32
    %221 = vector.shape_cast %33 : vector<1x128xi1> to vector<1x128xi1>
    %222 = vector.broadcast %221 : vector<1x128xi1> to vector<16x128xi1>
    %223 = vector.broadcast %cst_65 : f32 to vector<16x128xf32>
    %224 = arith.select %222, %220, %223 : vector<16x128xi1>, vector<16x128xf32>
    %225 = vector.broadcast %22 : vector<1x128xi32> to vector<16x128xi32>
    %226 = arith.cmpi eq, %16, %225 : vector<16x128xi32>
    %227 = vector.broadcast %33 : vector<1x128xi1> to vector<16x128xi1>
    %228 = arith.andi %227, %226 : vector<16x128xi1>
    %cst_66 = arith.constant 1.000000e+00 : f32
    %cst_67 = arith.constant 0.000000e+00 : f32
    %229 = vector.broadcast %cst_66 : f32 to vector<16x128xf32>
    %230 = vector.broadcast %cst_67 : f32 to vector<16x128xf32>
    %231 = arith.select %228, %229, %230 : vector<16x128xi1>, vector<16x128xf32>
    %c0_68 = arith.constant 0 : index
    %c0_69 = arith.constant 0 : index
    %c0_70 = arith.constant 0 : index
    %232 = vector.load %arg6[%c0_68, %c0_69, %c0_70] : memref<1x16x1xf32, #tpu.memory_space<vmem>>, vector<1x16x1xf32>
    %cst_71 = arith.constant dense<0.000000e+00> : vector<16xf32>
    %233 = vector.multi_reduction <add>, %224, %cst_71 [1] : vector<16x128xf32> to vector<16xf32>
    %234 = vector.shape_cast %233 : vector<16xf32> to vector<16x1xf32>
    %235 = vector.shape_cast %234 : vector<16x1xf32> to vector<1x16x1xf32>
    %236 = arith.addf %232, %235 : vector<1x16x1xf32>
    %c0_72 = arith.constant 0 : index
    %c0_73 = arith.constant 0 : index
    %c0_74 = arith.constant 0 : index
    %237 = vector.load %arg6[%c0_72, %c0_73, %c0_74] : memref<1x16x1xf32, #tpu.memory_space<vmem>>, vector<1x16x1xf32>
    tpu.vector_store %arg6[%c0_72, %c0_73, %c0_74], %236 {strides = array<i32>} : memref<1x16x1xf32, #tpu.memory_space<vmem>>, vector<1x16x1xf32>,
    %c0_75 = arith.constant 0 : index
    %c0_76 = arith.constant 0 : index
    %c0_77 = arith.constant 0 : index
    %238 = vector.load %arg7[%c0_75, %c0_76, %c0_77] : memref<1x16x1xf32, #tpu.memory_space<vmem>>, vector<1x16x1xf32>
    %cst_78 = arith.constant dense<0.000000e+00> : vector<16xf32>
    %239 = vector.multi_reduction <add>, %231, %cst_78 [1] : vector<16x128xf32> to vector<16xf32>
    %240 = vector.shape_cast %239 : vector<16xf32> to vector<16x1xf32>
    %241 = vector.shape_cast %240 : vector<16x1xf32> to vector<1x16x1xf32>
    %242 = arith.addf %238, %241 : vector<1x16x1xf32>
    %c0_79 = arith.constant 0 : index
    %c0_80 = arith.constant 0 : index
    %c0_81 = arith.constant 0 : index
    %243 = vector.load %arg7[%c0_79, %c0_80, %c0_81] : memref<1x16x1xf32, #tpu.memory_space<vmem>>, vector<1x16x1xf32>
    tpu.vector_store %arg7[%c0_79, %c0_80, %c0_81], %242 {strides = array<i32>} : memref<1x16x1xf32, #tpu.memory_space<vmem>>, vector<1x16x1xf32>,
    return
  }
  func.func @transform_0(%arg0: i32, %arg1: i32) -> i32 {
    %c0_i32 = arith.constant 0 : i32
    %c0_i32_0 = arith.constant 0 : i32
    return %c0_i32 : i32
  }
  func.func @transform_1(%arg0: i32, %arg1: i32) -> (i32, i32) {
    %c2_i32 = arith.constant 2 : i32
    %0 = arith.muli %arg0, %c2_i32 : i32
    %1 = arith.addi %0, %arg1 : i32
    %c0_i32 = arith.constant 0 : i32
    %c0_i32_0 = arith.constant 0 : i32
    return %c0_i32, %1 : i32, i32
  }
  func.func @transform_2(%arg0: i32, %arg1: i32) -> (i32, i32) {
    %c2_i32 = arith.constant 2 : i32
    %0 = arith.muli %arg0, %c2_i32 : i32
    %1 = arith.addi %0, %arg1 : i32
    %c0_i32 = arith.constant 0 : i32
    %c0_i32_0 = arith.constant 0 : i32
    return %c0_i32, %1 : i32, i32
  }
  func.func @transform_3(%arg0: i32, %arg1: i32) -> (i32, i32, i32) {
    %c2_i32 = arith.constant 2 : i32
    %0 = arith.muli %arg0, %c2_i32 : i32
    %1 = arith.addi %0, %arg1 : i32
    %c0_i32 = arith.constant 0 : i32
    %c0_i32_0 = arith.constant 0 : i32
    %c0_i32_1 = arith.constant 0 : i32
    return %c0_i32, %c0_i32_0, %1 : i32, i32, i32
  }
  func.func @transform_4(%arg0: i32, %arg1: i32) -> (i32, i32, i32) {
    %c0_i32 = arith.constant 0 : i32
    %c0_i32_0 = arith.constant 0 : i32
    %c0_i32_1 = arith.constant 0 : i32
    return %arg0, %c0_i32, %c0_i32_0 : i32, i32, i32
  }
  func.func @transform_5(%arg0: i32, %arg1: i32) -> (i32, i32, i32) {
    %c0_i32 = arith.constant 0 : i32
    %c0_i32_0 = arith.constant 0 : i32
    %c0_i32_1 = arith.constant 0 : i32
    return %arg0, %c0_i32, %c0_i32_0 : i32, i32, i32
  }
}

</mosaic_0001>

<bundles_post_ra>
// kernel: confidence_based_ce.1
= control target key start
LH: loop header
LB: loop body
LE: loop exit
PB: predicated region body
PF: predicated region fallthrough
CT: control target
= control target key end

     0   :  { %s2060_s0 = inlined_call_operand.<no memory space> [shape: f32[1], index: 0, kind: input, shape index: {}]   ;;  %s2061_s1 = inlined_call_operand.vmem [shape: f32[16,512], index: 1, kind: input, shape index: {}]   ;;  %s2062_s2 = inlined_call_operand.vmem [shape: f32[16,512], index: 2, kind: input, shape index: {}]   ;;  %s2063_s3 = inlined_call_operand.vmem [shape: f32[5,16,512], index: 3, kind: input, shape index: {}]   ;;  %s2064_s4 = inlined_call_operand.vmem [shape: f32[2,16,1], index: 4, kind: output, shape index: {0}]   ;;  %s2065_s5 = inlined_call_operand.vmem [shape: f32[2,16,1], index: 5, kind: output, shape index: {1}]  }
   0x1   :  { %11 = sst [smem:[#allocation2]] %s2060_s0 }
   0x2   :  { %s1492_s20 = smov 0   ;;  %s1494_s21 = smov 0  }
   0x3   :  { %s1496_s22 = smov 0   ;;  %s1498_s23 = smov 0  }
   0x4   :  { %s1500_s24 = smov 0   ;;  %s1502_s25 = smov 0  }
   0x5   :  { %s1504_s26 = smov 0  }
   0x6 LB: > { %s26_s0 = sadd.s32 1, %s1447_s24  ;;  %s29_s27 = sadd.s32 1, %s1451_s25  ;;  %s1455_s26 = sphi %s1504_s26, %s17_s26   ;;  %s1451_s25 = sphi %s1502_s25, %s2098_s25   ;;  %s1447_s24 = sphi %s1500_s24, %s2097_s24   ;;  %s1443_s23 = sphi %s1498_s23, %s2096_s23   ;;  %s1439_s22 = sphi %s1496_s22, %s2095_s22   ;;  %s1435_s21 = sphi %s1494_s21, %s2094_s21   ;;  %s1431_s20 = sphi %s1492_s20, %s2093_s20  }
   0x7   : > { %p27_p0 = scmp.ge.s32.totalorder %s26_s0, 2  ;;  %p68_p1 = scmp.ne.s32.totalorder %s1435_s21, %s1431_s20 }
   0x8   : > { %p69_p2 = scmp.eq.s32.totalorder %s1455_s26, 0  ;;  %s1226_s28 = sshll.u32 %s1451_s25, 1 }
   0x9   : > { %s2100_s0 = smov (%p27_p0, %s26_s0), 0  ;;  %s2102_s27 = smov (!%p27_p0, %s29_s27), %s1451_s25 }
   0xa   : > { %p31_p3 = scmp.ge.s32.totalorder %s2102_s27, 2  ;;  %p1536_p4 = por %p69_p2, %p68_p1 }
   0xb   : > { %s1543_s30 = sadd.s32 %s1447_s24, %s1226_s28  ;;  %s61_s9 = sadd.s32 1, %s1435_s21 }
   0xc   : > { %s2104_s27 = smov (%p31_p3, %s2102_s27), 0  ;;  %p1233_p6 = scmp.ge.s32.totalorder %s1455_s26, 4 }
   0xd   : > { %s1227_s6 = sshll.u32 %s2104_s27, 1 }
   0xe   : > { %s57_s7 = sadd.s32 %s1227_s6, %s2100_s0  ;;  %209 = sbr.rel (%p1233_p6) target bundleno = 45 (0x2d), region = 20 }
   0xf   : > { %s58_s8 = ssub.s32 %s1543_s30, %s57_s7 }
  0x10   : > { %p59_p5 = scmp.eq.s32.totalorder %s58_s8, 0 }
  0x12   : > { %s1550_s10 = scalar_select %p59_p5, %s1435_s21, %s61_s9  }
  0x13   : > { %212 = sbr.rel (!%p1536_p4) target bundleno = 25 (0x19), region = 24  ;;  %s214_s11 = sand.u32 (%p1536_p4), 1, %s1435_s21  }
  0x14   : > { %s1236_s12 = sshll.u32 (%p1536_p4), %s1543_s30, 3  ;;  %s1234_s13 = sshll.u32 (%p1536_p4), %s214_s11, 4 }
  0x15   : > { %s220_s16 = scalar_lea.vmem (%p1536_p4), %s2061_s1, %s1236_s12  ;;  %s216_s17 = scalar_lea.vmem (%p1536_p4), [#allocation3], %s1234_s13 }
  0x16   : > { %v251_v0 = vld [vmem:[%s220_s16] sm:$0xff] (%p1536_p4) }
  0x17   : > { %v253_v1 = vld [vmem:[%s220_s16 + $0x20] sm:$0xff] (%p1536_p4)  ;;  %252 = vst [vmem:[%s216_s17] sm:$0xff] (%p1536_p4), %v251_v0 }
  0x18   : > { %254 = vst [vmem:[%s216_s17 + $0x8] sm:$0xff] %v253_v1 }
  0x19 PF: > { %260 = sbr.rel (!%p1536_p4) target bundleno = 31 (0x1f), region = 62  ;;  %s262_s18 = sand.u32 (%p1536_p4), 1, %s1435_s21  }
  0x1a   : > { %s1239_s19 = sshll.u32 (%p1536_p4), %s1543_s30, 3  ;;  %s1237_s28 = sshll.u32 (%p1536_p4), %s262_s18, 4 }
  0x1b   : > { %s268_s8 = scalar_lea.vmem (%p1536_p4), %s2062_s2, %s1239_s19  ;;  %s264_s9 = scalar_lea.vmem (%p1536_p4), [#allocation4], %s1237_s28 }
  0x1c   : > { %v299_v2 = vld [vmem:[%s268_s8] sm:$0xff] (%p1536_p4) }
  0x1d   : > { %v301_v3 = vld [vmem:[%s268_s8 + $0x20] sm:$0xff] (%p1536_p4)  ;;  %300 = vst [vmem:[%s264_s9] sm:$0xff] (%p1536_p4), %v299_v2 }
  0x1e   : > { %302 = vst [vmem:[%s264_s9 + $0x8] sm:$0xff] %v301_v3 }
  0x1f PF: > { %308 = sbr.rel (!%p1536_p4) target bundleno = 45 (0x2d), region = 100  ;;  %s310_s11 = sand.u32 (%p1536_p4), 1, %s1435_s21  }
  0x20   : > { %s1241_s12 = sshll.u32 (%p1536_p4), %s1543_s30, 3  ;;  %s1269_s13 = smul.u32 (%p1536_p4), 80, %s310_s11 }
  0x21   : > { %s316_s16 = scalar_lea.vmem (%p1536_p4), %s2063_s3, %s1241_s12 }
  0x22   : > { %v363_v4 = vld [vmem:[%s316_s16] sm:$0xff] (%p1536_p4)  ;;  %s312_s17 = scalar_lea.vmem (%p1536_p4), [#allocation5], %s1269_s13 }
  0x23   : > { %v365_v5 = vld [vmem:[%s316_s16 + $0x20] sm:$0xff] (%p1536_p4)  ;;  %364 = vst [vmem:[%s312_s17] sm:$0xff] (%p1536_p4), %v363_v4 }
  0x24   : > { %v367_v6 = vld [vmem:[%s316_s16 + $0x40] sm:$0xff]  ;;  %366 = vst [vmem:[%s312_s17 + $0x8] sm:$0xff] %v365_v5 }
  0x25   : > { %v369_v7 = vld [vmem:[%s316_s16 + $0x60] sm:$0xff]  ;;  %368 = vst [vmem:[%s312_s17 + $0x10] sm:$0xff] %v367_v6 }
  0x26   : > { %v371_v8 = vld [vmem:[%s316_s16 + $0x80] sm:$0xff]  ;;  %370 = vst [vmem:[%s312_s17 + $0x18] sm:$0xff] %v369_v7 }
  0x27   : > { %v373_v9 = vld [vmem:[%s316_s16 + $0xa0] sm:$0xff]  ;;  %372 = vst [vmem:[%s312_s17 + $0x20] sm:$0xff] %v371_v8 }
  0x28   : > { %v375_v10 = vld [vmem:[%s316_s16 + $0xc0] sm:$0xff]  ;;  %374 = vst [vmem:[%s312_s17 + $0x28] sm:$0xff] %v373_v9 }
  0x29   : > { %v377_v11 = vld [vmem:[%s316_s16 + $0xe0] sm:$0xff]  ;;  %376 = vst [vmem:[%s312_s17 + $0x30] sm:$0xff] %v375_v10 }
  0x2a   : > { %v379_v12 = vld [vmem:[%s316_s16 + $0x100] sm:$0xff]  ;;  %378 = vst [vmem:[%s312_s17 + $0x38] sm:$0xff] %v377_v11 }
  0x2b   : > { %v381_v13 = vld [vmem:[%s316_s16 + $0x120] sm:$0xff]  ;;  %380 = vst [vmem:[%s312_s17 + $0x40] sm:$0xff] %v379_v12 }
  0x2c   : > { %382 = vst [vmem:[%s312_s17 + $0x48] sm:$0xff] %v381_v13 }
  0x2d PF: > { %p1242_p7 = scmp.ge.s32.totalorder %s1455_s26, 1  ;;  %p387_p8 = scmp.lt.s32.totalorder %s1455_s26, 5 }
  0x2f   : > { %p388_p9 = pnand %p1242_p7, %p387_p8 }
  0x30   : > { %s394_s29 = sand.u32 (!%p388_p9), 1, %s1431_s20   ;;  %p454_p10 = scmp.lt.s32.totalorder (!%p388_p9), %s1443_s23, 1 }
  0x31   : > { %391 = sbr.rel (%p388_p9) target bundleno = 443 (0x1bb), region = 138  ;;  %s1578_s30 = sshll.u32 (!%p388_p9), %s394_s29, 4 }
  0x32   : > { %s1270_s18 = smul.u32 (!%p388_p9), 80, %s394_s29  ;;  %s396_s13 = scalar_lea.vmem (!%p388_p9), [#allocation3], %s1578_s30 }
  0x33   : > { %s403_s20 = scalar_lea.vmem (!%p388_p9), [#allocation4], %s1578_s30  ;;  %p1249_p11 = scmp.ne.s32.totalorder (!%p388_p9), %s1439_s22, 0 }
  0x34   : > { %s1593_s14 = scalar_lea.vmem (!%p388_p9), [#allocation5], %s1270_s18 }
  0x36   : > { %s455_s19 = scalar_select %p454_p10, %s1443_s23, 1 }
  0x37   : > { %467 = sbr.rel (%p1249_p11) target bundleno = 65 (0x41), region = 154 }
  0x38   : > { %s1267_s28 = sshll.u32 %s455_s19, 4 }
  0x39   : > { %s1584_s8 = scalar_lea.vmem %s2064_s4, %s1267_s28  ;;  %s1589_s12 = scalar_lea.vmem %s2065_s5, %s1267_s28 }
  0x3c   : > { %vm468_vm0 = vcmask 7168   ;;  %v1457_v14 = vmov 0.0  }
  0x3d   : > { %469 = vst.msk [vmem:[%s1584_s8] sm:$0xff] %vm468_vm0, %v1457_v14 }
  0x3e   : > { %470 = vst.msk [vmem:[%s1584_s8 + $0x8] sm:$0xff] %vm468_vm0, %v1457_v14 }
  0x3f   : > { %471 = vst.msk [vmem:[%s1589_s12] sm:$0xff] %vm468_vm0, %v1457_v14 }
  0x40   : > { %472 = vst.msk [vmem:[%s1589_s12 + $0x8] sm:$0xff] %vm468_vm0, %v1457_v14 }
  0x41 PF: > { %v1600_v15 = vld [vmem:[%s396_s13] sm:$0xff]  ;;  %v1602_v16 = vld [vmem:[%s396_s13 + $0x8] sm:$0xff]  ;;  %v1617_v22 = vld [vmem:[%s1593_s14 + $0x10] sm:$0xff]  ;;  %s1250_s15 = sshll.u32 %s1443_s23, 1  ;;  %s1762_s16 = sld [smem:[#allocation2]] }
  0x42   : > { %v1605_v17 = vld [vmem:[%s1593_s14] sm:$0xff]  ;;  %v476_v18 = vmax.f32 %v1600_v15, %v1602_v16  ;;  %v548_v19 = vmul.f32 %v1600_v15, %v1600_v15  ;;  %v549_v20 = vmul.f32 %v1602_v16, %v1602_v16  ;;  %v1614_v21 = vld [vmem:[%s1593_s14 + $0x8] sm:$0xff]  ;;  %v1620_v23 = vld [vmem:[%s1593_s14 + $0x18] sm:$0xff]  ;;  %v665_v41 = vmul.f32 %v1617_v22, %v1617_v22  ;;  %s538_s23 = sadd.s32 %s1439_s22, %s1250_s15 }
  0x43   : > { %v559_v24 = vmax.f32 %v1605_v17, %v1614_v21  ;;  %v588_v25 = vmul.f32 %v1605_v17, %v1605_v17  ;;  %v589_v26 = vmul.f32 %v1614_v21, %v1614_v21  ;;  %v636_v28 = vmax.f32 %v1617_v22, %v1620_v23  ;;  %v1645_v52 = vld [vmem:[%s1593_s14 + $0x20] sm:$0xff]  ;;  %v1648_v53 = vld [vmem:[%s1593_s14 + $0x28] sm:$0xff]  ;;  %s1251_s22 = sshll.u32 %s538_s23, 7 }
  0x44   : > { %v477_v27 = vrot.slane %v476_v18, 4  ;;  %v550_v31 = vadd.f32 %v549_v20, %v548_v19  ;;  %v666_v42 = vmul.f32 %v1620_v23, %v1620_v23  ;;  %v713_v61 = vmax.f32 %v1645_v52, %v1648_v53 }
  0x45   : > { %v560_v29 = vrot.slane %v559_v24, 4  ;;  %v590_v32 = vadd.f32 %v589_v26, %v588_v25  ;;  %v637_v34 = vrot.slane %v636_v28, 4  ;;  %v743_v19 = vmul.f32 %v1648_v53, %v1648_v53 }
  0x46   : > { %v478_v30 = vmax.f32 %v476_v18, %v477_v27  ;;  %v551_v37 = vrot.slane %v550_v31, 4  ;;  %v667_v49 = vadd.f32 %v666_v42, %v665_v41  ;;  %v714_v3 = vrot.slane %v713_v61, 4 }
  0x47   : > { %v561_v33 = vmax.f32 %v559_v24, %v560_v29  ;;  %v591_v38 = vrot.slane %v590_v32, 4  ;;  %v638_v40 = vmax.f32 %v636_v28, %v637_v34  ;;  %v742_v18 = vmul.f32 %v1645_v52, %v1645_v52 }
  0x48   : > { %v479_v35 = vrot.slane %v478_v30, 2  ;;  %v552_v45 = vadd.f32 %v551_v37, %v550_v31  ;;  %v668_v60 = vrot.slane %v667_v49, 4  ;;  %v715_v4 = vmax.f32 %v713_v61, %v714_v3 }
  0x49   : > { %v562_v39 = vrot.slane %v561_v33, 2  ;;  %v592_v46 = vadd.f32 %v591_v38, %v590_v32  ;;  %v639_v48 = vrot.slane %v638_v40, 2  ;;  %v579_v20 = vmul.f32 %v1605_v17, %v1600_v15 }
  0x4a   : > { %v480_v36 = vmax.f32 %v478_v30, %v479_v35  ;;  %v553_v56 = vrot.slane %v552_v45, 2  ;;  %v669_v2 = vadd.f32 %v668_v60, %v667_v49  ;;  %v716_v12 = vrot.slane %v715_v4, 2 }
  0x4b   : > { %v563_v47 = vmax.f32 %v561_v33, %v562_v39  ;;  %v593_v57 = vrot.slane %v592_v46, 2  ;;  %v640_v59 = vmax.f32 %v638_v40, %v639_v48  ;;  %v580_v24 = vmul.f32 %v1614_v21, %v1602_v16 }
  0x4c   : > { %v481_v43 = vrot.slane %v480_v36, 1  ;;  %v554_v62 = vadd.f32 %v553_v56, %v552_v45  ;;  %v670_v11 = vrot.slane %v669_v2, 2  ;;  %v656_v25 = vmul.f32 %v1617_v22, %v1600_v15 }
  0x4d   : > { %v564_v58 = vrot.slane %v563_v47, 1  ;;  %v594_v63 = vadd.f32 %v593_v57, %v592_v46  ;;  %v641_v1 = vrot.slane %v640_v59, 1  ;;  %v717_v29 = vmax.f32 %v715_v4, %v716_v12  ;;  %v1682_v46 = vld [vmem:[%s1593_s14 + $0x30] sm:$0xff] }
  0x4e   : > { %v1634_v44 = vmax.f32 %v480_v36, %v481_v43  ;;  %v555_v6 = vrot.slane %v554_v62, 1  ;;  %v657_v32 = vmul.f32 %v1620_v23, %v1602_v16  ;;  %v671_v33 = vadd.f32 %v670_v11, %v669_v2 }
  0x4f   : > { %v565_v0 = vmax.f32 %v563_v47, %v564_v58  ;;  %v595_v7 = vrot.slane %v594_v63, 1  ;;  %v642_v10 = vmax.f32 %v640_v59, %v641_v1  ;;  %v744_v35 = vadd.f32 %v743_v19, %v742_v18  ;;  %v1685_v47 = vld [vmem:[%s1593_s14 + $0x38] sm:$0xff] }
  0x50   : > { %v1638_v50 = vsub.f32 %v1600_v15, %v1634_v44  ;;  %v1642_v51 = vsub.f32 %v1602_v16, %v1634_v44  ;;  %v1672_v27 = vadd.f32 %v555_v6, %v554_v62  ;;  %v581_v37 = vadd.f32 %v580_v24, %v579_v20 }
  0x51   : > { %v566_v9 = vsub.f32 %v1605_v17, %v565_v0  ;;  %v567_v14 = vsub.f32 %v1614_v21, %v565_v0  ;;  %v596_v28 = vadd.f32 %v595_v7, %v594_v63  ;;  %v643_v31 = vsub.f32 %v1617_v22, %v642_v10 }
  0x52   : > { %v485_v54 = vmul.f32 1.442695, %v1638_v50  ;;  %v487_v55 = vmul.f32 1.442695, %v1642_v51  ;;  %v644_v21 = vsub.f32 %v1620_v23, %v642_v10  ;;  %v718_v39 = vrot.slane %v717_v29, 1 }
  0x53   : > { %v568_v30 = vmul.f32 1.442695, %v566_v9  ;;  %v570_v17 = vmul.f32 1.442695, %v567_v14  ;;  %v1679_v38 = vmul.f32 %v596_v28, %v1672_v27  ;;  %v645_v40 = vmul.f32 1.442695, %v643_v31 }
  0x54   : > { %1329 = vpow2.f32 %v485_v54  ;;  %v658_v22 = vadd.f32 %v657_v32, %v656_v25  ;;  %v672_v41 = vrot.slane %v671_v33, 1  ;;  %v647_v43 = vmul.f32 1.442695, %v644_v21 }
  0x55   : > { %1331 = vpow2.f32 %v487_v55  ;;  %v745_v45 = vrot.slane %v744_v35, 4  ;;  %v582_v48 = vrot.slane %v581_v37, 4  ;;  %v719_v49 = vmax.f32 %v717_v29, %v718_v39 }
  0x56   : > { %1333 = vpow2.f32 %v568_v30  ;;  %v659_v54 = vrot.slane %v658_v22, 4  ;;  %v673_v55 = vadd.f32 %v672_v41, %v671_v33  ;;  %v790_v58 = vmax.f32 %v1682_v46, %v1685_v47 }
  0x57   : > { %1335 = vpow2.f32 %v570_v17  ;;  %v746_v57 = vadd.f32 %v745_v45, %v744_v35  ;;  %v519_v60 = vlaneseq  ;;  %vm522_vm1 = vcmp.eq.f32.partialorder %v1600_v15, %v1634_v44 }
  0x58   : > { %1337 = vrsqrt.f32 %v1679_v38  ;;  %v583_v62 = vadd.f32 %v582_v48, %v581_v37  ;;  %v720_v63 = vsub.f32 %v1645_v52, %v719_v49  ;;  %v660_v1 = vadd.f32 %v659_v54, %v658_v22 }
  0x59   : > { %1339 = vpow2.f32 %v645_v40  ;;  %v1698_v0 = vshrl.u32 %v519_v60, 7  ;;  %v1701_v2 = vmul.f32 %v673_v55, %v1672_v27  ;;  %v721_v3 = vsub.f32 %v1648_v53, %v719_v49 }
  0x5a   : > { %v1654_v5 = vpop.eup %1329  ;;  %1341 = vpow2.f32 %v647_v43  ;;  %vm523_vm2 = vcmp.eq.f32.partialorder %v1602_v16, %v1634_v44  ;;  %v747_v6 = vrot.slane %v746_v57, 2  ;;  %v791_v7 = vrot.slane %v790_v58, 4 }
  0x5b   : > { %v1656_v8 = vpop.eup %1331  ;;  %v1711_v10 = vadd.s32 8, %v1698_v0  ;;  %v524_v11 = vsel %vm522_vm1, %v1698_v0, 16  ;;  %v584_v14 = vrot.slane %v583_v62, 2  ;;  %v722_v18 = vmul.f32 1.442695, %v720_v63 }
  0x5c   : > { %v489_v13 = vadd.f32 %v1656_v8, %v1654_v5  ;;  %v1690_v59 = vpop.eup %1333  ;;  %v661_v20 = vrot.slane %v660_v1, 2  ;;  %v724_v44 = vmul.f32 1.442695, %v721_v3  ;;  %v792_v28 = vmax.f32 %v790_v58, %v791_v7 }
  0x5d   : > { %v1692_v61 = vpop.eup %1335  ;;  %v525_v19 = vsel %vm523_vm2, %v1711_v10, 16  ;;  %v585_v35 = vadd.f32 %v584_v14, %v583_v62  ;;  %v733_v49 = vmul.f32 %v1645_v52, %v1600_v15  ;;  %v820_v14 = vmul.f32 %v1685_v47, %v1685_v47 }
  0x5e   : > { %v490_v26 = vrot.slane %v489_v13, 4  ;;  %v1704_v4 = vpop.eup %1337  ;;  %v572_v12 = vadd.f32 %v1692_v61, %v1690_v59  ;;  %vm526_vm3 = vcmp.lt.s32.totalorder %v524_v11, %v525_v19  ;;  %v793_v37 = vrot.slane %v792_v28, 2 }
  0x5f   : > { %v1708_v9 = vpop.eup %1339  ;;  %v599_v25 = vmul.f32 %v1704_v4, %v1679_v38  ;;  %v527_v30 = vsel %vm526_vm3, %v524_v11, %v525_v19  ;;  %vm604_vm10 = vweird.f32 %v1679_v38  ;;  %vm605_vm11 = vweird.f32 %v1704_v4 }
  0x60   : > { %v491_v34 = vadd.f32 %v490_v26, %v489_v13  ;;  %v1716_v13 = vpop.eup %1341  ;;  %v748_v26 = vadd.f32 %v747_v6, %v746_v57  ;;  %v573_v31 = vrot.slane %v572_v12, 4  ;;  %v734_v57 = vmul.f32 %v1648_v53, %v1602_v16  ;;  %vm1801_vm14 = vmor %vm604_vm10, %vm605_vm11 }
  0x61   : > { %v649_v32 = vadd.f32 %v1716_v13, %v1708_v9  ;;  %v600_v55 = vmul.f32 %v1704_v4, %v599_v25  ;;  %v819_v53 = vmul.f32 %v1682_v46, %v1682_v46  ;;  %vm681_vm12 = vweird.f32 %v1701_v2 }
  0x62   : > { %v492_v36 = vrot.slane %v491_v34, 2  ;;  %v574_v41 = vadd.f32 %v573_v31, %v572_v12 }
  0x63   : > { %v650_v48 = vrot.slane %v649_v32, 4 }
  0x64   : > { %v493_v42 = vadd.f32 %v492_v36, %v491_v34  ;;  %v528_v34 = vrot.slane %v527_v30, 4  ;;  %v749_v36 = vrot.slane %v748_v26, 1  ;;  %v575_v6 = vrot.slane %v574_v41, 2 }
  0x65   : > { %v651_v12 = vadd.f32 %v650_v48, %v649_v32 }
  0x66   : > { %v494_v23 = vrot.slane %v493_v42, 1  ;;  %vm529_vm6 = vcmp.lt.s32.totalorder %v527_v30, %v528_v34  ;;  %v750_v63 = vadd.f32 %v749_v36, %v748_v26  ;;  %v821_v36 = vadd.f32 %v820_v14, %v819_v53  ;;  %v1784_v53 = vld [vmem:[%s1593_s14 + $0x40] sm:$0xff] }
  0x67   : > { %v530_v22 = vsel %vm529_vm6, %v527_v30, %v528_v34  ;;  %v652_v31 = vrot.slane %v651_v12, 2 }
  0x68   : > { %v495_v56 = vadd.f32 %v494_v23, %v493_v42  ;;  %v662_v42 = vadd.f32 %v661_v20, %v660_v1  ;;  %v531_v23 = vrot.slane %v530_v22, 2  ;;  %v794_v1 = vmax.f32 %v792_v28, %v793_v37 }
  0x69   : > { %v601_v20 = vmul.f32 0.5, %v600_v55  ;;  %v1760_v26 = vmul.f32 %v750_v63, %v1672_v27 }
  0x6a   : > { %1343 = vrcp.f32 %v495_v56  ;;  %vm501_vm4 = vweird.f32 %v495_v56  ;;  %v507_v33 = vand.u32 2147483648, %v495_v56  ;;  %v505_v21 = vand.u32 2147483647, %v495_v56 }
  0x6b   : > { %1345 = vrsqrt.f32 %v1701_v2  ;;  %v663_v7 = vrot.slane %v662_v42, 1  ;;  %vm532_vm9 = vcmp.lt.s32.totalorder %v530_v22, %v531_v23  ;;  %v795_v28 = vrot.slane %v794_v1, 1 }
  0x6c   : > { %1347 = vpow2.f32 %v722_v18  ;;  %v508_v45 = vor.u32 1.1754944e-38, %v507_v33  ;;  %vm506_vm8 = vcmp.eq.f32.partialorder %v505_v21, 8.507059e+37  ;;  %vm758_vm6 = vweird.f32 %v1760_v26 }
  0x6d   : > { %1349 = vpow2.f32 %v724_v44  ;;  %v735_v44 = vadd.f32 %v734_v57, %v733_v49  ;;  %v1769_v32 = vadd.f32 %v663_v7, %v662_v42  ;;  %v796_v43 = vmax.f32 %v794_v1, %v795_v28 }
  0x6e   : > { %1351 = vrsqrt.f32 %v1760_v26  ;;  %v653_v42 = vadd.f32 %v652_v31, %v651_v12  ;;  %v822_v57 = vrot.slane %v821_v36, 4  ;;  %v810_v31 = vmul.f32 %v1682_v46, %v1600_v15 }
  0x6f   : > { %v736_v21 = vrot.slane %v735_v44, 4  ;;  %v797_v48 = vsub.f32 %v1682_v46, %v796_v43  ;;  %v798_v49 = vsub.f32 %v1685_v47, %v796_v43 }
  0x70   : > { %v1344_v24 = vpop.eup %1343 }
  0x71   : > { %v497_v29 = vmul.f32 %v1344_v24, %v495_v56  ;;  %vm502_vm5 = vweird.f32 %v1344_v24  ;;  %v1724_v39 = vpop.eup %1345  ;;  %v586_v56 = vrot.slane %v585_v35, 1  ;;  %v737_v55 = vadd.f32 %v736_v21, %v735_v44 }
  0x72   : > { %vm1727_vm7 = vmor %vm501_vm4, %vm502_vm5  ;;  %v1736_v58 = vpop.eup %1347  ;;  %v676_v62 = vmul.f32 %v1724_v39, %v1701_v2  ;;  %v801_v63 = vmul.f32 1.442695, %v798_v49  ;;  %vm682_vm1 = vweird.f32 %v1724_v39 }
  0x73   : > { %v498_v17 = vsub.f32 1.0, %v497_v29  ;;  %v1740_v3 = vpop.eup %1349  ;;  %v533_v29 = vsel %vm532_vm9, %v530_v22, %v531_v23  ;;  %v1766_v30 = vadd.f32 %v586_v56, %v585_v35  ;;  %v541_v35 = vand.u32 127, %v519_v60  ;;  %vm1841_vm5 = vmor %vm681_vm12, %vm682_vm1 }
  0x74   : > { %v726_v25 = vadd.f32 %v1740_v3, %v1736_v58  ;;  %v534_v37 = vrot.slane %v533_v29, 1  ;;  %v542_v23 = vstv %s1251_s22  ;;  %v1789_v12 = vpop.eup %1351  ;;  %v738_v46 = vrot.slane %v737_v55, 2 }
  0x75   : > { %v499_v40 = vmul.f32 %v1344_v24, %v498_v17  ;;  %v602_v17 = vsub.f32 1.5, %v601_v20  ;;  %v654_v20 = vrot.slane %v653_v42, 1 }
  0x76   : > { %v727_v33 = vrot.slane %v726_v25, 4  ;;  %vm1777_vm13 = vcmp.lt.s32.totalorder %v533_v29, %v534_v37 }
  0x77   : > { %v500_v54 = vadd.f32 %v1344_v24, %v499_v40  ;;  %v603_v56 = vmul.f32 %v1704_v4, %v602_v17 }
  0x79   : > { %v504_v52 = vsel %vm1727_vm7, %v1344_v24, %v500_v54  ;;  %v677_v24 = vmul.f32 %v1724_v39, %v676_v62  ;;  %v799_v62 = vmul.f32 1.442695, %v797_v48  ;;  %v607_v21 = vsel %vm1801_vm14, %v1704_v4, %v603_v56 }
  0x7a   : > { %v509_v11 = vsel %vm506_vm8, %v508_v45, %v504_v52  ;;  %v728_v45 = vadd.f32 %v727_v33, %v726_v25  ;;  %v543_v52 = vadd.s32 %v542_v23, %v541_v35  ;;  %v1795_v25 = vsel %vm1777_vm13, %v533_v29, %v534_v37 }
  0x7b   : > { %v1750_v18 = vmul.f32 %v1654_v5, %v509_v11  ;;  %v1753_v19 = vmul.f32 %v1656_v8, %v509_v11  ;;  %v576_v8 = vadd.f32 %v575_v6, %v574_v41  ;;  %v678_v40 = vmul.f32 0.5, %v677_v24  ;;  %v1787_v11 = vld [vmem:[%s1593_s14 + $0x48] sm:$0xff] }
  0x7c   : > { %v545_v6 = vstv %s1762_s16  ;;  %v729_v7 = vrot.slane %v728_v45, 2  ;;  %1353 = vpow2.f32 %v799_v62  ;;  %v811_v29 = vmul.f32 %v1685_v47, %v1602_v16 }
  0x7d   : > { %v512_v5 = vmax.f32 %v1750_v18, %v1753_v19  ;;  %v577_v41 = vrot.slane %v576_v8, 1  ;;  %v679_v44 = vsub.f32 1.5, %v678_v40  ;;  %1355 = vpow2.f32 %v801_v63 }
  0x7e   : > { %v867_v33 = vmax.f32 %v1784_v53, %v1787_v11  ;;  %vm544_vm15 = vcmp.lt.s32.totalorder %v543_v52, 300  ;;  %v730_v38 = vadd.f32 %v729_v7, %v728_v45  ;;  %vm1050_vm0 = vcmp.eq.s32.totalorder %v1698_v0, %v1795_v25 }
  0x7f   : > { %v513_v34 = vrot.slane %v512_v5, 4  ;;  %v1791_v14 = vadd.f32 %v577_v41, %v576_v8  ;;  %v823_v8 = vadd.f32 %v822_v57, %v821_v36  ;;  %v1827_v40 = vadd.f32 %v654_v20, %v653_v42 }
  0x80   : > { %v680_v0 = vmul.f32 %v1724_v39, %v679_v44  ;;  %v812_v43 = vadd.f32 %v811_v29, %v810_v31  ;;  %v731_v4 = vrot.slane %v730_v38, 1  ;;  %v896_v45 = vmul.f32 %v1784_v53, %v1784_v53 }
  0x81   : > { %v514_v22 = vmax.f32 %v512_v5, %v513_v34  ;;  %v753_v5 = vmul.f32 %v1789_v12, %v1760_v26  ;;  %1357 = vrcp.f32 %v1791_v14  ;;  %v824_v47 = vrot.slane %v823_v8, 2 }
  0x82   : > { %v1821_v36 = vpop.eup %1353  ;;  %v1458_v48 = vmov 0.0   ;;  %v897_v60 = vmul.f32 %v1787_v11, %v1787_v11  ;;  %v608_v56 = vmul.f32 %v607_v21, %v1766_v30  ;;  %v624_v62 = vand.u32 2147483648, %v1791_v14 }
  0x83   : > { %v515_v54 = vrot.slane %v514_v22, 2  ;;  %v754_v17 = vmul.f32 %v1789_v12, %v753_v5  ;;  %v825_v41 = vadd.f32 %v824_v47, %v823_v8  ;;  %v1834_v23 = vpop.eup %1355  ;;  %1359 = vrcp.f32 %v1827_v40 }
  0x84   : > { %v803_v63 = vadd.f32 %v1834_v23, %v1821_v36  ;;  %v813_v2 = vrot.slane %v812_v43, 4  ;;  %v1857_v20 = vadd.f32 %v731_v4, %v730_v38  ;;  %vm759_vm7 = vweird.f32 %v1789_v12 }
  0x85   : > { %v516_v1 = vmax.f32 %v514_v22, %v515_v54  ;;  %v868_v22 = vrot.slane %v867_v33, 4  ;;  %v755_v35 = vmul.f32 0.5, %v754_v17  ;;  %v739_v54 = vadd.f32 %v738_v46, %v737_v55  ;;  %vm1878_vm8 = vmor %vm758_vm6, %vm759_vm7 }
  0x86   : > { %v684_v55 = vsel %vm1841_vm5, %v1724_v39, %v680_v0  ;;  %v804_v44 = vrot.slane %v803_v63, 4  ;;  %v887_v31 = vmul.f32 %v1784_v53, %v1600_v15  ;;  %v888_v38 = vmul.f32 %v1787_v11, %v1602_v16 }
  0x87   : > { %v517_v24 = vrot.slane %v516_v1, 1  ;;  %v869_v57 = vmax.f32 %v867_v33, %v868_v22  ;;  %v1852_v7 = vpop.eup %1357  ;;  %v756_v30 = vsub.f32 1.5, %v755_v35  ;;  %v814_v33 = vadd.f32 %v813_v2, %v812_v43 }
  0x88   : > { %v805_v8 = vadd.f32 %v804_v44, %v803_v63  ;;  %1361 = vrcp.f32 %v1857_v20  ;;  %v609_v0 = vmul.f32 2.0, %v608_v56  ;;  %v614_v15 = vmul.f32 %v1852_v7, %v1791_v14 }
  0x89   : > { %v518_v34 = vmax.f32 %v516_v1, %v517_v24  ;;  %v826_v1 = vrot.slane %v825_v41, 1  ;;  %v870_v52 = vrot.slane %v869_v57, 2  ;;  %v740_v24 = vrot.slane %v739_v54, 1  ;;  %v1870_v47 = vpop.eup %1359 }
  0x8a   : > { %v757_v17 = vmul.f32 %v1789_v12, %v756_v30  ;;  %v806_v21 = vrot.slane %v805_v8, 2  ;;  %v685_v22 = vmul.f32 %v684_v55, %v1769_v32  ;;  %vm618_vm9 = vweird.f32 %v1791_v14 }
  0x8b   : > { %vm546_vm2 = vcmp.gt.f32.partialorder %v518_v34, %v545_v6  ;;  %v898_v6 = vadd.f32 %v897_v60, %v896_v45  ;;  %v827_v28 = vadd.f32 %v826_v1, %v825_v41  ;;  %v871_v5 = vmax.f32 %v869_v57, %v870_v52 }
  0x8c   : > { %vm1823_vm3 = vmand %vm546_vm2, %vm544_vm15  ;;  %v741_v4 = vadd.f32 %v740_v24, %v739_v54  ;;  %v807_v35 = vadd.f32 %v806_v21, %v805_v8  ;;  %v815_v45 = vrot.slane %v814_v33, 2  ;;  %v889_v26 = vadd.f32 %v888_v38, %v887_v31 }
  0x8d   : > { %vm1052_vm4 = vmand %vm1823_vm3, %vm1050_vm0  ;;  %v899_v29 = vrot.slane %v898_v6, 4  ;;  %v1864_v34 = vmul.f32 %v827_v28, %v1672_v27  ;;  %v872_v39 = vrot.slane %v871_v5, 1  ;;  %v691_v57 = vmul.f32 %v1870_v47, %v1827_v40 }
  0x8e   : > { %v1054_v49 = vsel %vm1052_vm4, 1.0, %v1458_v48  ;;  %v761_v60 = vsel %vm1878_vm8, %v1789_v12, %v757_v17  ;;  %v808_v56 = vrot.slane %v807_v35, 1  ;;  %v1252_v54 = vadd.f32 -2.0, %v609_v0  ;;  %v1892_v52 = vpop.eup %1361 }
  0x8f   : > { %1069 = vadd.xlane.f32.xlu1 %v1054_v49  ;;  %v900_v46 = vadd.f32 %v899_v29, %v898_v6  ;;  %1363 = vrsqrt.f32 %v1864_v34  ;;  %v873_v16 = vmax.f32 %v871_v5, %v872_v39  ;;  %v615_v63 = vsub.f32 1.0, %v614_v15 }
  0x90   : > { %v686_v6 = vmul.f32 2.0, %v685_v22  ;;  %v762_v44 = vmul.f32 %v761_v60, %v741_v4  ;;  %v816_v24 = vadd.f32 %v815_v45, %v814_v33  ;;  %v890_v28 = vrot.slane %v889_v26, 4 }
  0x91   : > { %v901_v41 = vrot.slane %v900_v46, 2  ;;  %v874_v49 = vsub.f32 %v1784_v53, %v873_v16  ;;  %v875_v42 = vsub.f32 %v1787_v11, %v873_v16  ;;  %v622_v53 = vand.u32 2147483647, %v1791_v14 }
  0x92   : > { %v1895_v11 = vadd.f32 %v808_v56, %v807_v35  ;;  %v625_v12 = vor.u32 1.1754944e-38, %v624_v62  ;;  %v692_v5 = vsub.f32 1.0, %v691_v57  ;;  %v611_v31 = vmul.f32 1.442695, %v1252_v54 }
  0x93   : > { %v902_v32 = vadd.f32 %v901_v41, %v900_v46  ;;  %v876_v1 = vmul.f32 1.442695, %v874_v49  ;;  %v878_v2 = vmul.f32 1.442695, %v875_v42  ;;  %v616_v29 = vmul.f32 %v1852_v7, %v615_v63 }
  0x94   : > { %vm619_vm10 = vweird.f32 %v1852_v7  ;;  %v1255_v38 = vadd.f32 -2.0, %v686_v6  ;;  %v768_v17 = vmul.f32 %v1892_v52, %v1857_v20  ;;  %v763_v21 = vmul.f32 2.0, %v762_v44 }
  0x95   : > { %v903_v55 = vrot.slane %v902_v32, 1  ;;  %v1364_v30 = vpop.eup %1363  ;;  %1365 = vpow2.f32 %v876_v1  ;;  %v817_v46 = vrot.slane %v816_v24, 1  ;;  %v891_v62 = vadd.f32 %v890_v28, %v889_v26  ;;  %vm1920_vm14 = vmor %vm618_vm9, %vm619_vm10 }
  0x96   : > { %v830_v8 = vmul.f32 %v1364_v30, %v1864_v34  ;;  %1367 = vrcp.f32 %v1895_v11  ;;  %v693_v15 = vmul.f32 %v1870_v47, %v692_v5  ;;  %vm835_vm11 = vweird.f32 %v1864_v34 }
  0x97   : > { %1369 = vpow2.f32 %v878_v2  ;;  %v904_v39 = vadd.f32 %v903_v55, %v902_v32  ;;  %vm836_vm12 = vweird.f32 %v1364_v30  ;;  %v617_v22 = vadd.f32 %v1852_v7, %v616_v29 }
  0x98   : > { %v831_v33 = vmul.f32 %v1364_v30, %v830_v8  ;;  %vm695_vm13 = vweird.f32 %v1827_v40  ;;  %v699_v4 = vand.u32 2147483647, %v1827_v40  ;;  %v688_v41 = vmul.f32 1.442695, %v1255_v38  ;;  %vm1931_vm0 = vmor %vm835_vm11, %vm836_vm12 }
  0x99   : > { %v1904_v0 = vmul.f32 %v904_v39, %v1672_v27  ;;  %vm696_vm15 = vweird.f32 %v1870_v47  ;;  %v701_v45 = vand.u32 2147483648, %v1827_v40  ;;  %v1258_v26 = vadd.f32 -2.0, %v763_v21 }
  0x9a   : > { %v832_v43 = vmul.f32 0.5, %v831_v33  ;;  %v769_v57 = vsub.f32 1.0, %v768_v17  ;;  %v818_v60 = vadd.f32 %v817_v46, %v816_v24  ;;  %v892_v56 = vrot.slane %v891_v62, 2  ;;  %vm1945_vm2 = vmor %vm695_vm13, %vm696_vm15 }
  0x9b   : > { %v1908_v16 = vpop.eup %1365  ;;  %1371 = vrsqrt.f32 %v1904_v0  ;;  %v694_v32 = vadd.f32 %v1870_v47, %v693_v15  ;;  %v621_v1 = vsel %vm1920_vm14, %v1852_v7, %v617_v22  ;;  %vm623_vm1 = vcmp.eq.f32.partialorder %v622_v53, 8.507059e+37 }
  0x9c   : > { %v1914_v35 = vpop.eup %1367  ;;  %v833_v49 = vsub.f32 1.5, %v832_v43  ;;  %1373 = vpow2.f32 %v611_v31  ;;  %vm1949_vm4 = vcmp.eq.f32.partialorder %v699_v4, 8.507059e+37  ;;  %v702_v55 = vor.u32 1.1754944e-38, %v701_v45 }
  0x9d   : > { %v1926_v42 = vpop.eup %1369  ;;  %v845_v6 = vmul.f32 %v1914_v35, %v1895_v11  ;;  %1375 = vpow2.f32 %v688_v41  ;;  %v765_v24 = vmul.f32 1.442695, %v1258_v26  ;;  %v770_v40 = vmul.f32 %v1892_v52, %v769_v57 }
  0x9e   : > { %v834_v54 = vmul.f32 %v1364_v30, %v833_v49  ;;  %v880_v63 = vadd.f32 %v1926_v42, %v1908_v16  ;;  %v893_v5 = vadd.f32 %v892_v56, %v891_v62  ;;  %v626_v8 = vsel %vm623_vm1, %v625_v12, %v621_v1 }
  0x9f   : > { %v698_v31 = vsel %vm1945_vm2, %v1870_v47, %v694_v32  ;;  %vm772_vm5 = vweird.f32 %v1857_v20  ;;  %vm773_vm6 = vweird.f32 %v1892_v52  ;;  %v846_v38 = vsub.f32 1.0, %v845_v6 }
  0xa0   : > { %v838_v7 = vsel %vm1931_vm0, %v1364_v30, %v834_v54  ;;  %v881_v53 = vrot.slane %v880_v63, 4  ;;  %v776_v33 = vand.u32 2147483647, %v1857_v20  ;;  %v778_v21 = vand.u32 2147483648, %v1857_v20  ;;  %vm1967_vm7 = vmor %vm772_vm5, %vm773_vm6 }
  0xa1   : > { %v1372_v44 = vpop.eup %1371  ;;  %v839_v28 = vmul.f32 %v838_v7, %v818_v60  ;;  %1377 = vpow2.f32 %v765_v24  ;;  %v771_v62 = vadd.f32 %v1892_v52, %v770_v40  ;;  %v894_v15 = vrot.slane %v893_v5, 1 }
  0xa2   : > { %v882_v29 = vadd.f32 %v881_v53, %v880_v63  ;;  %v907_v39 = vmul.f32 %v1372_v44, %v1904_v0  ;;  %v1374_v17 = vpop.eup %1373  ;;  %vm912_vm8 = vweird.f32 %v1904_v0  ;;  %vm913_vm9 = vweird.f32 %v1372_v44 }
  0xa3   : > { %v840_v30 = vmul.f32 2.0, %v839_v28  ;;  %v1376_v43 = vpop.eup %1375  ;;  %v628_v41 = vmul.f32 %v1374_v17, %v626_v8  ;;  %v703_v20 = vsel %vm1949_vm4, %v702_v55, %v698_v31  ;;  %v847_v49 = vmul.f32 %v1914_v35, %v846_v38  ;;  %vm914_vm13 = vmor %vm912_vm8, %vm913_vm9 }
  0xa4   : > { %v883_v46 = vrot.slane %v882_v29, 2  ;;  %v908_v12 = vmul.f32 %v1372_v44, %v907_v39  ;;  %vm1975_vm10 = vcmp.eq.f32.partialorder %v776_v33, 8.507059e+37  ;;  %v779_v57 = vor.u32 1.1754944e-38, %v778_v21 }
  0xa5   : > { %v1261_v47 = vadd.f32 -2.0, %v840_v30  ;;  %v775_v56 = vsel %vm1967_vm7, %v1892_v52, %v771_v62  ;;  %vm849_vm11 = vweird.f32 %v1895_v11  ;;  %vm850_vm12 = vweird.f32 %v1914_v35 }
  0xa6   : > { %v884_v4 = vadd.f32 %v883_v46, %v882_v29  ;;  %v909_v27 = vmul.f32 0.5, %v908_v12  ;;  %v895_v0 = vadd.f32 %v894_v15, %v893_v5  ;;  %v705_v32 = vmul.f32 %v1376_v43, %v703_v20  ;;  %vm1989_vm14 = vmor %vm849_vm11, %vm850_vm12 }
  0xa7   : > { %v842_v45 = vmul.f32 1.442695, %v1261_v47  ;;  %v855_v54 = vand.u32 2147483648, %v1895_v11  ;;  %v1378_v34 = vpop.eup %1377  ;;  %v848_v2 = vadd.f32 %v1914_v35, %v847_v49  ;;  %v853_v6 = vand.u32 2147483647, %v1895_v11 }
  0xa8   : > { %v885_v60 = vrot.slane %v884_v4, 1  ;;  %v910_v14 = vsub.f32 1.5, %v909_v27  ;;  %v780_v52 = vsel %vm1975_vm10, %v779_v57, %v775_v56  ;;  %v629_v53 = vmul.f32 %v1690_v59, %v628_v41 }
  0xa9   : > { %1379 = vpow2.f32 %v842_v45  ;;  %v630_v40 = vmul.f32 %v1692_v61, %v628_v41  ;;  %v706_v28 = vmul.f32 %v1708_v9, %v705_v32  ;;  %v707_v5 = vmul.f32 %v1716_v13, %v705_v32 }
  0xaa   : > { %v886_v63 = vadd.f32 %v885_v60, %v884_v4  ;;  %v911_v1 = vmul.f32 %v1372_v44, %v910_v14  ;;  %v856_v8 = vor.u32 1.1754944e-38, %v855_v54  ;;  %v782_v11 = vmul.f32 %v1378_v34, %v780_v52 }
  0xab   : > { %v852_v31 = vsel %vm1989_vm14, %v1914_v35, %v848_v2  ;;  %vm854_vm15 = vcmp.eq.f32.partialorder %v853_v6, 8.507059e+37  ;;  %v708_v38 = vadd.f32 %v706_v28, %v629_v53  ;;  %v709_v17 = vadd.f32 %v707_v5, %v630_v40 }
  0xac   : > { %v915_v7 = vsel %vm914_vm13, %v1372_v44, %v911_v1  ;;  %1381 = vrcp.f32 %v886_v63  ;;  %v857_v59 = vsel %vm854_vm15, %v856_v8, %v852_v31  ;;  %v783_v61 = vmul.f32 %v1736_v58, %v782_v11  ;;  %v1018_v31 = vld [vmem:[%s403_s20] sm:$0xff] }
  0xad   : > { %v916_v24 = vmul.f32 %v915_v7, %v895_v0  ;;  %v784_v13 = vmul.f32 %v1740_v3, %v782_v11  ;;  %vm926_vm0 = vweird.f32 %v886_v63  ;;  %v930_v21 = vand.u32 2147483647, %v886_v63 }
  0xae   : > { %v932_v46 = vand.u32 2147483648, %v886_v63  ;;  %v785_v47 = vadd.f32 %v783_v61, %v708_v38  ;;  %vm1051_vm12 = vcmp.eq.s32.totalorder %v1711_v10, %v1795_v25 }
  0xaf   : > { %v917_v29 = vmul.f32 2.0, %v916_v24  ;;  %v1380_v39 = vpop.eup %1379  ;;  %v786_v15 = vadd.f32 %v784_v13, %v709_v17  ;;  %vm931_vm4 = vcmp.eq.f32.partialorder %v930_v21, 8.507059e+37  ;;  %vm1053_vm13 = vmand %vm1823_vm3, %vm1051_vm12 }
  0xb0   : > { %v859_v12 = vmul.f32 %v1380_v39, %v857_v59  ;;  %v933_v43 = vor.u32 1.1754944e-38, %v932_v46 }
  0xb1   : > { %v1264_v44 = vadd.f32 -2.0, %v917_v29  ;;  %v1019_v29 = vld [vmem:[%s403_s20 + $0x8] sm:$0xff] }
  0xb2   : > { %v1382_v30 = vpop.eup %1381  ;;  %v860_v22 = vmul.f32 %v1821_v36, %v859_v12  ;;  %v861_v58 = vmul.f32 %v1834_v23, %v859_v12  ;;  %v1020_v39 = vmax.f32 %v1018_v31, %v1019_v29 }
  0xb3   : > { %v919_v33 = vmul.f32 1.442695, %v1264_v44  ;;  %v922_v9 = vmul.f32 %v1382_v30, %v886_v63  ;;  %vm927_vm1 = vweird.f32 %v1382_v30 }
  0xb4   : > { %vm928_vm2 = vmor %vm926_vm0, %vm927_vm1  ;;  %v862_v20 = vadd.f32 %v860_v22, %v785_v47  ;;  %v863_v45 = vadd.f32 %v861_v58, %v786_v15 }
  0xb5   : > { %1383 = vpow2.f32 %v919_v33  ;;  %v923_v35 = vsub.f32 1.0, %v922_v9 }
  0xb7   : > { %v924_v62 = vmul.f32 %v1382_v30, %v923_v35 }
  0xb9   : > { %v925_v4 = vadd.f32 %v1382_v30, %v924_v62 }
  0xbb   : > { %v1384_v27 = vpop.eup %1383  ;;  %v929_v3 = vsel %vm928_vm2, %v1382_v30, %v925_v4  ;;  %v1021_v30 = vrot.slane %v1020_v39, 4  ;;  %vm1064_vm2 = vcmask 7168  }
  0xbc   : > { %v934_v41 = vsel %vm931_vm4, %v933_v43, %v929_v3 }
  0xbd   : > { %v936_v49 = vmul.f32 %v1384_v27, %v934_v41  ;;  %v1022_v59 = vmax.f32 %v1020_v39, %v1021_v30 }
  0xbf   : > { %v937_v26 = vmul.f32 %v1908_v16, %v936_v49  ;;  %v938_v57 = vmul.f32 %v1926_v42, %v936_v49  ;;  %v1023_v61 = vrot.slane %v1022_v59, 2 }
  0xc1   : > { %v939_v60 = vadd.f32 %v937_v26, %v862_v20  ;;  %v940_v14 = vadd.f32 %v938_v57, %v863_v45  ;;  %v1024_v9 = vmax.f32 %v1022_v59, %v1023_v61 }
  0xc3   : > { %v941_v56 = vadd.f32 %v940_v14, %v939_v60 }
  0xc5   : > { %v942_v0 = vrot.slane %v941_v56, 4 }
  0xc7   : > { %v943_v32 = vadd.f32 %v942_v0, %v941_v56 }
  0xc9   : > { %v944_v36 = vrot.slane %v943_v32, 2 }
  0xcb   : > { %v945_v54 = vadd.f32 %v944_v36, %v943_v32 }
  0xcd   : > { %v946_v23 = vrot.slane %v945_v54, 1 }
  0xcf   : > { %v947_v63 = vadd.f32 %v946_v23, %v945_v54 }
  0xd1   : > { %1385 = vrcp.f32 %v947_v63  ;;  %v959_v2 = vand.u32 2147483648, %v947_v63  ;;  %vm953_vm5 = vweird.f32 %v947_v63  ;;  %v957_v16 = vand.u32 2147483647, %v947_v63 }
  0xd3   : > { %v960_v52 = vor.u32 1.1754944e-38, %v959_v2  ;;  %vm958_vm8 = vcmp.eq.f32.partialorder %v957_v16, 8.507059e+37 }
  0xd7   : > { %v1386_v1 = vpop.eup %1385 }
  0xd8   : > { %v949_v34 = vmul.f32 %v1386_v1, %v947_v63  ;;  %vm954_vm6 = vweird.f32 %v1386_v1 }
  0xd9   : > { %vm955_vm7 = vmor %vm953_vm5, %vm954_vm6 }
  0xda   : > { %v950_v6 = vsub.f32 1.0, %v949_v34 }
  0xdc   : > { %v951_v42 = vmul.f32 %v1386_v1, %v950_v6 }
  0xde   : > { %v952_v55 = vadd.f32 %v1386_v1, %v951_v42 }
  0xe0   : > { %v956_v7 = vsel %vm955_vm7, %v1386_v1, %v952_v55 }
  0xe1   : > { %v961_v53 = vsel %vm958_vm8, %v960_v52, %v956_v7 }
  0xe2   : > { %v963_v24 = vmul.f32 %v961_v53, %v939_v60  ;;  %v964_v40 = vmul.f32 %v961_v53, %v940_v14 }
  0xe4   : > { %v965_v28 = vsub.f32 %v1750_v18, %v963_v24  ;;  %v966_v5 = vsub.f32 %v1753_v19, %v964_v40  ;;  %v1025_v18 = vrot.slane %v1024_v9, 1 }
  0xe6   : > { %v967_v8 = vmul.f32 %v965_v28, %v965_v28  ;;  %v968_v11 = vmul.f32 %v966_v5, %v966_v5  ;;  %v1026_v19 = vmax.f32 %v1024_v9, %v1025_v18  ;;  %v1067_v9 = vld [vmem:[%s1589_s12] sm:$0xff]  ;;  %v1068_v18 = vld [vmem:[%s1589_s12 + $0x8] sm:$0xff] }
  0xe8   : > { %v969_v44 = vadd.f32 %v968_v11, %v967_v8  ;;  %v2012_v12 = vsub.f32 %v1018_v31, %v1026_v19  ;;  %v2014_v35 = vsub.f32 %v1019_v29, %v1026_v19  ;;  %v1056_v19 = vld [vmem:[%s1584_s8] sm:$0xff] }
  0xea   : > { %v970_v38 = vrot.slane %v969_v44, 4  ;;  %v1029_v15 = vmul.f32 1.442695, %v2012_v12  ;;  %v1031_v22 = vmul.f32 1.442695, %v2014_v35 }
  0xec   : > { %v971_v17 = vadd.f32 %v970_v38, %v969_v44 }
  0xee   : > { %v972_v33 = vrot.slane %v971_v17, 2 }
  0xf0   : > { %v973_v13 = vadd.f32 %v972_v33, %v971_v17 }
  0xf2   : > { %v974_v21 = vrot.slane %v973_v13, 1 }
  0xf4   : > { %v975_v46 = vadd.f32 %v974_v21, %v973_v13 }
  0xf6   : > { %1387 = vrsqrt.f32 %v975_v46  ;;  %vm982_vm9 = vweird.f32 %v975_v46 }
  0xf7   : > { %1389 = vpow2.f32 %v1029_v15 }
  0xf8   : > { %1391 = vpow2.f32 %v1031_v22 }
  0xfc   : > { %v1388_v62 = vpop.eup %1387 }
  0xfd   : > { %v977_v47 = vmul.f32 %v1388_v62, %v975_v46  ;;  %vm983_vm10 = vweird.f32 %v1388_v62  ;;  %v1390_v41 = vpop.eup %1389 }
  0xfe   : > { %vm984_vm11 = vmor %vm982_vm9, %vm983_vm10  ;;  %v1392_v45 = vpop.eup %1391 }
  0xff   : > { %v978_v43 = vmul.f32 %v1388_v62, %v977_v47  ;;  %v1033_v60 = vadd.f32 %v1392_v45, %v1390_v41 }
 0x101   : > { %v979_v58 = vmul.f32 0.5, %v978_v43  ;;  %v1034_v0 = vrot.slane %v1033_v60, 4 }
 0x102   : > { %v1070_v33 = vpop.xlane.xlu1 %1069 }
 0x103   : > { %v980_v4 = vsub.f32 1.5, %v979_v58  ;;  %v1035_v32 = vadd.f32 %v1034_v0, %v1033_v60  ;;  %v1073_v13 = vadd.f32 %v1070_v33, %v1067_v9 }
 0x105   : > { %v981_v27 = vmul.f32 %v1388_v62, %v980_v4  ;;  %v1036_v63 = vrot.slane %v1035_v32, 2  ;;  %1075 = vst.msk [vmem:[%s1589_s12] sm:$0xff] %vm1064_vm2, %v1073_v13 }
 0x107   : > { %v985_v3 = vsel %vm984_vm11, %v1388_v62, %v981_v27  ;;  %v1037_v2 = vadd.f32 %v1036_v63, %v1035_v32  ;;  %v1057_v62 = vld [vmem:[%s1584_s8 + $0x8] sm:$0xff] }
 0x108   : > { %v986_v20 = vmax.f32 %v985_v3, 1.0 }
 0x109   : > { %v1038_v16 = vrot.slane %v1037_v2, 1 }
 0x10a   : > { %v987_v49 = vmin.f32 %v986_v20, 100.0 }
 0x10b   : > { %v1039_v55 = vadd.f32 %v1038_v16, %v1037_v2 }
 0x10c   : > { %v988_v26 = vmul.f32 %v987_v49, %v1638_v50  ;;  %v989_v57 = vmul.f32 %v987_v49, %v1642_v51  ;;  %v1055_v51 = vsel %vm1053_vm13, 1.0, %v1458_v48 }
 0x10d   : > { %1071 = vadd.xlane.f32.xlu1 %v1055_v51 }
 0x10e   : > { %v990_v14 = vmul.f32 1.442695, %v988_v26  ;;  %v992_v56 = vmul.f32 1.442695, %v989_v57 }
 0x110   : > { %1393 = vpow2.f32 %v990_v14 }
 0x111   : > { %1395 = vpow2.f32 %v992_v56 }
 0x116   : > { %v1394_v36 = vpop.eup %1393 }
 0x117   : > { %v1396_v54 = vpop.eup %1395 }
 0x118   : > { %v994_v23 = vadd.f32 %v1396_v54, %v1394_v36 }
 0x11a   : > { %v995_v1 = vrot.slane %v994_v23, 4 }
 0x11c   : > { %v996_v34 = vadd.f32 %v995_v1, %v994_v23 }
 0x11e   : > { %v997_v50 = vrot.slane %v996_v34, 2 }
 0x120   : > { %v998_v6 = vadd.f32 %v997_v50, %v996_v34 }
 0x122   : > { %v999_v42 = vrot.slane %v998_v6, 1 }
 0x124   : > { %v1000_v52 = vadd.f32 %v999_v42, %v998_v6 }
 0x126   : > { %1397 = vrcp.f32 %v1000_v52  ;;  %v1012_v40 = vand.u32 2147483648, %v1000_v52  ;;  %vm1006_vm14 = vweird.f32 %v1000_v52  ;;  %v1010_v10 = vand.u32 2147483647, %v1000_v52 }
 0x127   : > { %1399 = vlog2.f32 %v1039_v55 }
 0x128   : > { %v1013_v48 = vor.u32 1.1754944e-38, %v1012_v40  ;;  %vm1011_vm1 = vcmp.eq.f32.partialorder %v1010_v10, 8.507059e+37 }
 0x12c   : > { %v1398_v7 = vpop.eup %1397 }
 0x12d   : > { %v1002_v53 = vmul.f32 %v1398_v7, %v1000_v52  ;;  %v1400_v24 = vpop.eup %1399  ;;  %vm1007_vm15 = vweird.f32 %v1398_v7 }
 0x12e   : > { %v1041_v5 = vmul.f32 0.6931472, %v1400_v24  ;;  %vm1008_vm0 = vmor %vm1006_vm14, %vm1007_vm15 }
 0x12f   : > { %v1003_v28 = vsub.f32 1.0, %v1002_v53 }
 0x130   : > { %v1042_v31 = vsub.f32 %v2012_v12, %v1041_v5  ;;  %v1043_v38 = vsub.f32 %v2014_v35, %v1041_v5 }
 0x131   : > { %v1004_v25 = vmul.f32 %v1398_v7, %v1003_v28 }
 0x133   : > { %v1005_v8 = vadd.f32 %v1398_v7, %v1004_v25 }
 0x135   : > { %v1009_v11 = vsel %vm1008_vm0, %v1398_v7, %v1005_v8 }
 0x136   : > { %v1014_v29 = vsel %vm1011_vm1, %v1013_v48, %v1009_v11 }
 0x137   : > { %v1016_v39 = vmul.f32 %v1394_v36, %v1014_v29  ;;  %v1017_v30 = vmul.f32 %v1396_v54, %v1014_v29 }
 0x139   : > { %v1044_v44 = vmul.f32 %v1042_v31, %v1016_v39  ;;  %v1045_v17 = vmul.f32 %v1043_v38, %v1017_v30 }
 0x13b   : > { %v1048_v59 = vsel %vm1823_vm3, %v1044_v44, 0.0  ;;  %v1049_v61 = vsel %vm1823_vm3, %v1045_v17, 0.0 }
 0x13c   : > { %1058 = vadd.xlane.f32.xlu0 %v1048_v59 }
 0x144   : > { %1060 = vadd.xlane.f32.xlu0 %v1049_v61 }
 0x180   : > { %v1072_v21 = vpop.xlane.xlu1 %1071 }
 0x181   : > { %v1074_v46 = vadd.f32 %v1072_v21, %v1068_v18 }
 0x183   : > { %1076 = vst.msk [vmem:[%s1589_s12 + $0x8] sm:$0xff] %vm1064_vm2, %v1074_v46 }
 0x1af   : > { %v1059_v12 = vpop.xlane.xlu0 %1058 }
 0x1b0   : > { %v1062_v35 = vadd.f32 %v1059_v12, %v1056_v19 }
 0x1b2   : > { %1065 = vst.msk [vmem:[%s1584_s8] sm:$0xff] %vm1064_vm2, %v1062_v35 }
 0x1b7   : > { %v1061_v47 = vpop.xlane.xlu0 %1060 }
 0x1b8   : > { %v1063_v37 = vadd.f32 %v1061_v47, %v1057_v62 }
 0x1ba   : > { %1066 = vst.msk [vmem:[%s1584_s8 + $0x8] sm:$0xff] %vm1064_vm2, %v1063_v37 }
 0x1bb PF: > { %s17_s26 = sadd.s32 1, %s1455_s26   ;;  %s2093_s20 = smov %s1435_s21 }
 0x1bc   : > { %p14_p12 = scmp.ge.s32.totalorder %s17_s26, 6   ;;  %s2094_s21 = smov %s1550_s10 }
 0x1bd   : > { %s2095_s22 = smov %s1447_s24  ;;  %s2096_s23 = smov %s1451_s25 }
 0x1be   : > { %s2097_s24 = smov %s2100_s0  ;;  %s2098_s25 = smov %s2104_s27 }
 0x1bf   :  { %16 = sbr.rel (!%p14_p12) target bundleno = 6 (0x6), region = 221 }

</bundles_post_ra>
